<compile_context>
chip_gen: v5e
topology: v5e:2x2
jax: 0.10.0
libtpu: 0.0.40
codegen_flags: <defaults>
</compile_context>

<pallas_src>
import jax
import jax.numpy as jnp
from jax import lax
from jax.experimental import pallas as pl
from jax.experimental.pallas import tpu as pltpu
import numpy as np


def _round_up(v, m):
    return ((v + m - 1) // m) * m


# ----------------------------- Pallas kernel --------------------------------


def nmt_encoder_kernel(
    nsteps_ref,    # SMEM (1,) int32 : max(lengths)
    x_ref,         # (T, Bp, Ep) bf16 : embedded inputs (time-major, padded)
    mask_ref,      # (T, Bp, 1)  f32  : 1.0 where t < length
    wih_f_ref,     # (Ep, 3*Hp)  bf16 : forward W_ih^T, gate-padded
    wih_b_ref,     # (Ep, 3*Hp)  bf16 : backward W_ih^T, gate-padded
    bih_f_ref,     # (1, 3*Hp)   f32  : [b_ir+b_hr | b_iz+b_hz | b_in] fwd
    bih_b_ref,     # (1, 3*Hp)   f32  : same, bwd
    whh_f_ref,     # (Hp, 3*Hp)  bf16
    whh_b_ref,     # (Hp, 3*Hp)  bf16
    bhn_f_ref,     # (1, Hp)     f32  : b_hn fwd (must stay inside r*(...))
    bhn_b_ref,     # (1, Hp)     f32  : b_hn bwd
    out_f_ref,     # (T, Bp, Hp) f32  : forward hidden sequence
    out_b_ref,     # (T, Bp, Hp) f32  : backward hidden sequence
    hfin_f_ref,    # (Bp, Hp)    f32  : forward last hidden
    hfin_b_ref,    # (Bp, Hp)    f32  : backward last hidden
    gi_f_scratch,  # VMEM (T, Bp, 3*Hp) bf16 : precomputed fwd input projections
    gi_b_scratch,  # VMEM (T, Bp, 3*Hp) bf16 : precomputed bwd input projections
):
    T, Bp, Ep = x_ref.shape
    Hp = whh_f_ref.shape[0]
    H3 = 3 * Hp

    # ---- phase 1: one big MXU matmul per direction for all timesteps ----
    # (bias b_ir+b_hr, b_iz+b_hz, b_in already folded into bih)
    x_all = x_ref[...].reshape(T * Bp, Ep)                       # bf16
    gi_f = jnp.dot(x_all, wih_f_ref[...],
                   preferred_element_type=jnp.float32) + bih_f_ref[...]
    gi_f_scratch[...] = gi_f.reshape(T, Bp, H3).astype(jnp.bfloat16)
    gi_b = jnp.dot(x_all, wih_b_ref[...],
                   preferred_element_type=jnp.float32) + bih_b_ref[...]
    gi_b_scratch[...] = gi_b.reshape(T, Bp, H3).astype(jnp.bfloat16)

    n_steps = nsteps_ref[0]
    h0 = jnp.zeros((Bp, Hp), jnp.float32)

    def gru_step(h, gi_t, m, whh_ref, bhn_ref):
        # h: (Bp,Hp) f32; gi_t: (Bp,3Hp) f32; m: (Bp,1) f32.
        # Loop-invariant weights are loaded from VMEM per step (cheap vld slots)
        # instead of being kept live across the whole recurrence (spills).
        gh = jnp.dot(h.astype(jnp.bfloat16), whh_ref[...],
                     preferred_element_type=jnp.float32)         # (Bp, 3Hp)
        i_r, i_z, i_n = gi_t[:, :Hp], gi_t[:, Hp:2 * Hp], gi_t[:, 2 * Hp:]
        h_r, h_z, h_n = gh[:, :Hp], gh[:, Hp:2 * Hp], gh[:, 2 * Hp:]
        r = jax.nn.sigmoid(i_r + h_r)                 # b_ir + b_hr already in i_r
        z = jax.nn.sigmoid(i_z + h_z)                 # b_iz + b_hz already in i_z
        n = jnp.tanh(i_n + r * (h_n + bhn_ref[...]))  # only b_hn left per step
        h_new = (1.0 - z) * n + z * h
        return jnp.where(m > 0.0, h_new, h)

    # ---- phase 2: merged forward/backward recurrence (two independent chains) ----
    def body(i, carry):
        h_f, h_b = carry
        t_f = i
        t_b = n_steps - 1 - i

        gi_f_t = gi_f_scratch[t_f].astype(jnp.float32)   # (Bp, 3Hp) aligned load
        gi_b_t = gi_b_scratch[t_b].astype(jnp.float32)
        m_f = mask_ref[t_f]
        m_b = mask_ref[t_b]

        h_f = gru_step(h_f, gi_f_t, m_f, whh_f_ref, bhn_f_ref)
        h_b = gru_step(h_b, gi_b_t, m_b, whh_b_ref, bhn_b_ref)

        out_f_ref[t_f] = jnp.where(m_f > 0.0, h_f, 0.0)
        out_b_ref[t_b] = jnp.where(m_b > 0.0, h_b, 0.0)
        return (h_f, h_b)

    h_f, h_b = lax.fori_loop(0, n_steps, body, (h0, h0))
    hfin_f_ref[...] = h_f
    hfin_b_ref[...] = h_b

    # Zero only the never-written tail t in [n_steps, T) (padded positions
    # inside [0, n_steps) are already zeroed by the masked stores above).
    def zero_tail(t, _):
        z = jnp.zeros((Bp, Hp), jnp.float32)
        out_f_ref[t] = z
        out_b_ref[t] = z
        return 0

    lax.fori_loop(n_steps, jnp.int32(T), zero_tail, 0)


# --------------------------- parameter packing --------------------------------
# Done once per model (host-side numpy), reused across forward calls.


def _pad_gate_weight_np(w, H, Hp, in_dim, in_pad):
    """PyTorch gate-stacked (3H, in_dim) weight -> lane-padded transpose (in_pad, 3Hp)."""
    w = np.asarray(w, np.float32)
    out = np.zeros((in_pad, 3 * Hp), np.float32)
    for g in range(3):
        out[:in_dim, g * Hp:g * Hp + H] = w[g * H:(g + 1) * H, :].T
    return out


def _pad_combined_rz_bias_np(b_ih, b_hh, H, Hp):
    """Fold b_hr/b_hz into the r/z gate biases; keep only b_in for gate n."""
    b_ih = np.asarray(b_ih, np.float32)
    b_hh = np.asarray(b_hh, np.float32)
    out = np.zeros((1, 3 * Hp), np.float32)
    out[0, 0:H] = b_ih[0:H] + b_hh[0:H]                    # r
    out[0, Hp:Hp + H] = b_ih[H:2 * H] + b_hh[H:2 * H]      # z
    out[0, 2 * Hp:2 * Hp + H] = b_ih[2 * H:3 * H]          # n (input side only)
    return out


def _pad_hn_bias_np(b_hh, H, Hp):
    out = np.zeros((1, Hp), np.float32)
    out[0, :H] = np.asarray(b_hh, np.float32)[2 * H:3 * H]
    return out


def pack_nmt_encoder_params(params):
    """One-time packing: gate/lane padding, bias folding, bf16 casts."""
    emb = np.asarray(params["embedding"], np.float32)
    V, E = emb.shape
    H = int(np.asarray(params["whh_f"]).shape[1])

    Hp = _round_up(H, 128)
    Ep = _round_up(E, 128)

    emb_p = np.zeros((V, Ep), np.float32)
    emb_p[:, :E] = emb

    return {
        "H": H, "E": E, "Hp": Hp, "Ep": Ep,
        "emb": jnp.asarray(emb_p, jnp.float32),
        "wih_f": jnp.asarray(_pad_gate_weight_np(params["wih_f"], H, Hp, E, Ep), jnp.bfloat16),
        "wih_b": jnp.asarray(_pad_gate_weight_np(params["wih_b"], H, Hp, E, Ep), jnp.bfloat16),
        "bih_f": jnp.asarray(_pad_combined_rz_bias_np(params["bih_f"], params["bhh_f"], H, Hp), jnp.float32),
        "bih_b": jnp.asarray(_pad_combined_rz_bias_np(params["bih_b"], params["bhh_b"], H, Hp), jnp.float32),
        "whh_f": jnp.asarray(_pad_gate_weight_np(params["whh_f"], H, Hp, H, Hp), jnp.bfloat16),
        "whh_b": jnp.asarray(_pad_gate_weight_np(params["whh_b"], H, Hp, H, Hp), jnp.bfloat16),
        "bhn_f": jnp.asarray(_pad_hn_bias_np(params["bhh_f"], H, Hp), jnp.float32),
        "bhn_b": jnp.asarray(_pad_hn_bias_np(params["bhh_b"], H, Hp), jnp.float32),
    }


# ------------------------------ wrapper --------------------------------------


def nmt_encoder_forward(tokens, lengths, packed):
    """tokens: (B, T) int32, lengths: (B,) int32. Returns (seq (B,T,2H), last (B,2H))."""
    H, Hp, Ep = packed["H"], packed["Hp"], packed["Ep"]
    B, T = tokens.shape
    Bp = _round_up(B, 8)

    tok_p = jnp.zeros((Bp, T), tokens.dtype).at[:B].set(tokens)
    len_p = jnp.zeros((Bp,), jnp.int32).at[:B].set(lengths.astype(jnp.int32))

    # Gather embeddings directly into time-major (T, Bp, Ep); dropout is identity (eval).
    x_tbe = jnp.take(packed["emb"], tok_p.T, axis=0).astype(jnp.bfloat16)

    mask = (jnp.arange(T)[:, None] < len_p[None, :]).astype(jnp.float32)[:, :, None]  # (T,Bp,1)

    n_steps = jnp.max(len_p).astype(jnp.int32).reshape(1)

    # VMEM footprint (bytes) + headroom -> vmem_limit_bytes.
    bf2, f4 = 2, 4
    vmem_bytes = (
        T * Bp * Ep * bf2            # x
        + T * Bp * 1 * f4            # mask
        + 2 * Ep * 3 * Hp * bf2      # wih (fwd+bwd)
        + 2 * 3 * Hp * f4            # bih
        + 2 * Hp * 3 * Hp * bf2      # whh
        + 2 * Hp * f4                # bhn
        + 2 * T * Bp * Hp * f4       # output sequences
        + 2 * Bp * Hp * f4           # final hiddens
        + 2 * T * Bp * 3 * Hp * bf2  # gi scratch (bf16)
    )
    # TODO(synk): if this exceeds ~64 MiB (v7x per-TC VMEM), switch to T-streaming.
    vmem_limit = int(max(32 << 20, min(int(vmem_bytes * 1.5) + (2 << 20), 112 << 20)))

    vmem = pl.BlockSpec(memory_space=pltpu.MemorySpace.VMEM)
    smem = pl.BlockSpec(memory_space=pltpu.MemorySpace.SMEM)

    out_f, out_b, h_f, h_b = pl.pallas_call(
        nmt_encoder_kernel,
        out_shape=(
            jax.ShapeDtypeStruct((T, Bp, Hp), jnp.float32),
            jax.ShapeDtypeStruct((T, Bp, Hp), jnp.float32),
            jax.ShapeDtypeStruct((Bp, Hp), jnp.float32),
            jax.ShapeDtypeStruct((Bp, Hp), jnp.float32),
        ),
        in_specs=[smem] + [vmem] * 10,
        out_specs=(vmem, vmem, vmem, vmem),
        scratch_shapes=[
            pltpu.VMEM((T, Bp, 3 * Hp), jnp.bfloat16),
            pltpu.VMEM((T, Bp, 3 * Hp), jnp.bfloat16),
        ],
        compiler_params=pltpu.CompilerParams(vmem_limit_bytes=vmem_limit),
    )(n_steps, x_tbe, mask,
      packed["wih_f"], packed["wih_b"], packed["bih_f"], packed["bih_b"],
      packed["whh_f"], packed["whh_b"], packed["bhn_f"], packed["bhn_b"])

    # Strip batch / lane padding, restore batch-first PyTorch layout.
    seq = jnp.concatenate([out_f[:, :B, :H], out_b[:, :B, :H]], axis=-1)    # (T, B, 2H)
    seq = jnp.transpose(seq, (1, 0, 2))                                     # (B, T, 2H)
    last = jnp.concatenate([h_f[:B, :H], h_b[:B, :H]], axis=-1)             # (B, 2H)
    return seq, last


# ------------------------- pure-JAX reference --------------------------------


def _gru_cell_ref(x_t, h, wih_t, whh_t, bih, bhh, H):
    gi = jnp.dot(x_t, wih_t) + bih
    gh = jnp.dot(h, whh_t) + bhh
    i_r, i_z, i_n = gi[:, :H], gi[:, H:2 * H], gi[:, 2 * H:]
    h_r, h_z, h_n = gh[:, :H], gh[:, H:2 * H], gh[:, 2 * H:]
    r = jax.nn.sigmoid(i_r + h_r)
    z = jax.nn.sigmoid(i_z + h_z)
    n = jnp.tanh(i_n + r * h_n)
    return (1.0 - z) * n + z * h


def _reference_forward(tokens, lengths, params):
    emb = jnp.take(params["embedding"], tokens, axis=0)          # (B, T, E)
    x_tbe = jnp.transpose(emb, (1, 0, 2)).astype(jnp.float32)    # (T, B, E)
    T, B, _ = x_tbe.shape
    H = params["whh_f"].shape[1]
    mask = (jnp.arange(T)[:, None] < lengths[None, :]).astype(jnp.float32)[:, :, None]

    def run_dir(wih, whh, bih, bhh, reverse):
        h = jnp.zeros((B, H), jnp.float32)
        outs = [None] * T
        order = range(T - 1, -1, -1) if reverse else range(T)
        for t in order:
            m = mask[t]
            h_new = _gru_cell_ref(x_tbe[t], h, wih.T, whh.T,
                                  bih.reshape(1, -1), bhh.reshape(1, -1), H)
            h = m * h_new + (1.0 - m) * h
            outs[t] = m * h
        return jnp.stack(outs, 0), h

    of, hf = run_dir(params["wih_f"], params["whh_f"], params["bih_f"], params["bhh_f"], False)
    ob, hb = run_dir(params["wih_b"], params["whh_b"], params["bih_b"], params["bhh_b"], True)
    seq = jnp.transpose(jnp.concatenate([of, ob], -1), (1, 0, 2))
    last = jnp.concatenate([hf, hb], -1)
    return seq, last


# --------------------------------- main ---------------------------------------


def _init_params(key, vocab, emb_dim, hidden, pad_idx):
    ks = jax.random.split(key, 9)
    scale = 1.0 / np.sqrt(hidden)
    emb = jax.random.normal(ks[0], (vocab, emb_dim), jnp.float32) * 0.1
    emb = emb.at[pad_idx].set(0.0)  # padding_idx row zeroed, like nn.Embedding
    u = lambda k, shp: jax.random.uniform(k, shp, jnp.float32, -scale, scale)
    return {
        "embedding": emb,
        "wih_f": u(ks[1], (3 * hidden, emb_dim)),
        "whh_f": u(ks[2], (3 * hidden, hidden)),
        "bih_f": u(ks[3], (3 * hidden,)),
        "bhh_f": u(ks[4], (3 * hidden,)),
        "wih_b": u(ks[5], (3 * hidden, emb_dim)),
        "whh_b": u(ks[6], (3 * hidden, hidden)),
        "bih_b": u(ks[7], (3 * hidden,)),
        "bhh_b": u(ks[8], (3 * hidden,)),
    }


if __name__ == "__main__":
    B, T = 2, 8
    VOCAB, EMB, HID = 20, 32, 32
    PAD_IDX = 0

    key = jax.random.PRNGKey(0)
    k_tok, k_par = jax.random.split(key)

    lengths = jnp.array([8, 5], dtype=jnp.int32)  # descending, as pack_padded_sequence expects
    tokens = jax.random.randint(k_tok, (B, T), 1, VOCAB, dtype=jnp.int32)
    pad_mask = jnp.arange(T)[None, :] < lengths[:, None]
    tokens = jnp.where(pad_mask, tokens, PAD_IDX)

    params = _init_params(k_par, VOCAB, EMB, HID, PAD_IDX)
    packed = pack_nmt_encoder_params(params)   # one-time weight packing

    seq, last = nmt_encoder_forward(tokens, lengths, packed)
    seq, last = jax.block_until_ready((seq, last))

    ref_seq, ref_last = _reference_forward(tokens, lengths, params)
    np.testing.assert_allclose(np.asarray(seq), np.asarray(ref_seq), rtol=2e-2, atol=2e-2)
    np.testing.assert_allclose(np.asarray(last), np.asarray(ref_last), rtol=2e-2, atol=2e-2)

    # Second case with max(lengths) < T exercises the tail-zeroing path.
    lengths2 = jnp.array([6, 4], dtype=jnp.int32)
    pad_mask2 = jnp.arange(T)[None, :] < lengths2[:, None]
    tokens2 = jnp.where(pad_mask2, tokens, PAD_IDX)
    seq2, last2 = jax.block_until_ready(nmt_encoder_forward(tokens2, lengths2, packed))
    ref_seq2, ref_last2 = _reference_forward(tokens2, lengths2, params)
    np.testing.assert_allclose(np.asarray(seq2), np.asarray(ref_seq2), rtol=2e-2, atol=2e-2)
    np.testing.assert_allclose(np.asarray(last2), np.asarray(ref_last2), rtol=2e-2, atol=2e-2)

    assert seq.shape == (B, T, 2 * HID)
    assert last.shape == (B, 2 * HID)
    print("KERNEL_OK")
</pallas_src>

<mosaic_0001>
module attributes {stable_mosaic.version = 11 : i64} {
  func.func @nmt_encoder_kernel(%arg0: memref<1xi32, #tpu.memory_space<smem>>, %arg1: memref<8x8x128xbf16, #tpu.memory_space<vmem>>, %arg2: memref<8x8x1xf32, #tpu.memory_space<vmem>>, %arg3: memref<128x384xbf16, #tpu.memory_space<vmem>>, %arg4: memref<128x384xbf16, #tpu.memory_space<vmem>>, %arg5: memref<1x384xf32, #tpu.memory_space<vmem>>, %arg6: memref<1x384xf32, #tpu.memory_space<vmem>>, %arg7: memref<128x384xbf16, #tpu.memory_space<vmem>>, %arg8: memref<128x384xbf16, #tpu.memory_space<vmem>>, %arg9: memref<1x128xf32, #tpu.memory_space<vmem>>, %arg10: memref<1x128xf32, #tpu.memory_space<vmem>>, %arg11: memref<8x8x128xf32, #tpu.memory_space<vmem>>, %arg12: memref<8x8x128xf32, #tpu.memory_space<vmem>>, %arg13: memref<8x128xf32, #tpu.memory_space<vmem>>, %arg14: memref<8x128xf32, #tpu.memory_space<vmem>>, %arg15: memref<8x8x384xbf16, #tpu.memory_space<vmem>>, %arg16: memref<8x8x384xbf16, #tpu.memory_space<vmem>>) attributes {dimension_semantics = [], scalar_prefetch = 0 : i64, scratch_operands = 2 : i64, tpu.core_type = #tpu.core_type<tc>} {
    %c0 = arith.constant 0 : index
    %c0_0 = arith.constant 0 : index
    %c0_1 = arith.constant 0 : index
    %0 = vector.load %arg1[%c0, %c0_0, %c0_1] : memref<8x8x128xbf16, #tpu.memory_space<vmem>>, vector<8x8x128xbf16>
    %1 = vector.shape_cast %0 : vector<8x8x128xbf16> to vector<64x128xbf16>
    %c0_2 = arith.constant 0 : index
    %c0_3 = arith.constant 0 : index
    %2 = vector.load %arg3[%c0_2, %c0_3] : memref<128x384xbf16, #tpu.memory_space<vmem>>, vector<128x384xbf16>
    %cst = arith.constant dense<0.000000e+00> : vector<64x384xf32>
    %3 = tpu.matmul %1, %2, %cst {dimension_numbers = #tpu.dot_dimension_numbers<[1], [0], [0], [1], [0, 0, 1, 1], [], []>} : vector<64x128xbf16>, vector<128x384xbf16>, vector<64x384xf32> -> vector<64x384xf32>
    %c0_4 = arith.constant 0 : index
    %c0_5 = arith.constant 0 : index
    %4 = vector.load %arg5[%c0_4, %c0_5] : memref<1x384xf32, #tpu.memory_space<vmem>>, vector<1x384xf32>
    %5 = vector.broadcast %4 : vector<1x384xf32> to vector<64x384xf32>
    %6 = arith.addf %3, %5 : vector<64x384xf32>
    %7 = vector.shape_cast %6 : vector<64x384xf32> to vector<8x8x384xf32>
    %8 = arith.truncf %7 : vector<8x8x384xf32> to vector<8x8x384xbf16>
    %c0_6 = arith.constant 0 : index
    %c0_7 = arith.constant 0 : index
    %c0_8 = arith.constant 0 : index
    %9 = vector.load %arg15[%c0_6, %c0_7, %c0_8] : memref<8x8x384xbf16, #tpu.memory_space<vmem>>, vector<8x8x384xbf16>
    tpu.vector_store %arg15[%c0_6, %c0_7, %c0_8], %8 {strides = array<i32>} : memref<8x8x384xbf16, #tpu.memory_space<vmem>>, vector<8x8x384xbf16>,
    %c0_9 = arith.constant 0 : index
    %c0_10 = arith.constant 0 : index
    %10 = vector.load %arg4[%c0_9, %c0_10] : memref<128x384xbf16, #tpu.memory_space<vmem>>, vector<128x384xbf16>
    %cst_11 = arith.constant dense<0.000000e+00> : vector<64x384xf32>
    %11 = tpu.matmul %1, %10, %cst_11 {dimension_numbers = #tpu.dot_dimension_numbers<[1], [0], [0], [1], [0, 0, 1, 1], [], []>} : vector<64x128xbf16>, vector<128x384xbf16>, vector<64x384xf32> -> vector<64x384xf32>
    %c0_12 = arith.constant 0 : index
    %c0_13 = arith.constant 0 : index
    %12 = vector.load %arg6[%c0_12, %c0_13] : memref<1x384xf32, #tpu.memory_space<vmem>>, vector<1x384xf32>
    %13 = vector.broadcast %12 : vector<1x384xf32> to vector<64x384xf32>
    %14 = arith.addf %11, %13 : vector<64x384xf32>
    %15 = vector.shape_cast %14 : vector<64x384xf32> to vector<8x8x384xf32>
    %16 = arith.truncf %15 : vector<8x8x384xf32> to vector<8x8x384xbf16>
    %c0_14 = arith.constant 0 : index
    %c0_15 = arith.constant 0 : index
    %c0_16 = arith.constant 0 : index
    %17 = vector.load %arg16[%c0_14, %c0_15, %c0_16] : memref<8x8x384xbf16, #tpu.memory_space<vmem>>, vector<8x8x384xbf16>
    tpu.vector_store %arg16[%c0_14, %c0_15, %c0_16], %16 {strides = array<i32>} : memref<8x8x384xbf16, #tpu.memory_space<vmem>>, vector<8x8x384xbf16>,
    %c0_17 = arith.constant 0 : index
    %18 = memref.load %arg0[%c0_17] : memref<1xi32, #tpu.memory_space<smem>>
    %cst_18 = arith.constant 0.000000e+00 : f32
    %19 = vector.broadcast %cst_18 : f32 to vector<8x128xf32>
    %c0_i32 = arith.constant 0 : i32
    %20 = arith.subi %18, %c0_i32 : i32
    %21 = arith.addi %c0_i32, %20 : i32
    %c1_i32 = arith.constant 1 : i32
    %22:2 = scf.for %arg17 = %c0_i32 to %21 step %c1_i32 iter_args(%arg18 = %19, %arg19 = %19) -> (vector<8x128xf32>, vector<8x128xf32>)  : i32 {
      %c1_i32_25 = arith.constant 1 : i32
      %28 = arith.subi %18, %c1_i32_25 : i32
      %29 = arith.subi %28, %arg17 : i32
      %30 = arith.index_cast %arg17 : i32 to index
      %c0_26 = arith.constant 0 : index
      %c0_27 = arith.constant 0 : index
      %31 = vector.load %arg15[%30, %c0_26, %c0_27] : memref<8x8x384xbf16, #tpu.memory_space<vmem>>, vector<1x8x384xbf16>
      %32 = vector.shape_cast %31 : vector<1x8x384xbf16> to vector<8x384xbf16>
      %33 = arith.extf %32 : vector<8x384xbf16> to vector<8x384xf32>
      %34 = arith.index_cast %29 : i32 to index
      %c0_28 = arith.constant 0 : index
      %c0_29 = arith.constant 0 : index
      %35 = vector.load %arg16[%34, %c0_28, %c0_29] : memref<8x8x384xbf16, #tpu.memory_space<vmem>>, vector<1x8x384xbf16>
      %36 = vector.shape_cast %35 : vector<1x8x384xbf16> to vector<8x384xbf16>
      %37 = arith.extf %36 : vector<8x384xbf16> to vector<8x384xf32>
      %38 = arith.index_cast %arg17 : i32 to index
      %c0_30 = arith.constant 0 : index
      %c0_31 = arith.constant 0 : index
      %39 = vector.load %arg2[%38, %c0_30, %c0_31] : memref<8x8x1xf32, #tpu.memory_space<vmem>>, vector<1x8x1xf32>
      %40 = vector.shape_cast %39 : vector<1x8x1xf32> to vector<8x1xf32>
      %41 = arith.index_cast %29 : i32 to index
      %c0_32 = arith.constant 0 : index
      %c0_33 = arith.constant 0 : index
      %42 = vector.load %arg2[%41, %c0_32, %c0_33] : memref<8x8x1xf32, #tpu.memory_space<vmem>>, vector<1x8x1xf32>
      %43 = vector.shape_cast %42 : vector<1x8x1xf32> to vector<8x1xf32>
      %44 = arith.truncf %arg18 : vector<8x128xf32> to vector<8x128xbf16>
      %c0_34 = arith.constant 0 : index
      %c0_35 = arith.constant 0 : index
      %45 = vector.load %arg7[%c0_34, %c0_35] : memref<128x384xbf16, #tpu.memory_space<vmem>>, vector<128x384xbf16>
      %cst_36 = arith.constant dense<0.000000e+00> : vector<8x384xf32>
      %46 = tpu.matmul %44, %45, %cst_36 {dimension_numbers = #tpu.dot_dimension_numbers<[1], [0], [0], [1], [0, 0, 1, 1], [], []>} : vector<8x128xbf16>, vector<128x384xbf16>, vector<8x384xf32> -> vector<8x384xf32>
      %47 = vector.extract_strided_slice %33 {offsets = [0, 0], sizes = [8, 128], strides = [1, 1]} : vector<8x384xf32> to vector<8x128xf32>
      %48 = vector.extract_strided_slice %33 {offsets = [0, 128], sizes = [8, 128], strides = [1, 1]} : vector<8x384xf32> to vector<8x128xf32>
      %49 = vector.extract_strided_slice %33 {offsets = [0, 256], sizes = [8, 128], strides = [1, 1]} : vector<8x384xf32> to vector<8x128xf32>
      %50 = vector.extract_strided_slice %46 {offsets = [0, 0], sizes = [8, 128], strides = [1, 1]} : vector<8x384xf32> to vector<8x128xf32>
      %51 = vector.extract_strided_slice %46 {offsets = [0, 128], sizes = [8, 128], strides = [1, 1]} : vector<8x384xf32> to vector<8x128xf32>
      %52 = vector.extract_strided_slice %46 {offsets = [0, 256], sizes = [8, 128], strides = [1, 1]} : vector<8x384xf32> to vector<8x128xf32>
      %53 = arith.addf %47, %50 : vector<8x128xf32>
      %54 = arith.negf %53 : vector<8x128xf32>
      %55 = math.exp %54 : vector<8x128xf32>
      %cst_37 = arith.constant 1.000000e+00 : f32
      %56 = vector.broadcast %cst_37 : f32 to vector<8x128xf32>
      %57 = arith.addf %56, %55 : vector<8x128xf32>
      %58 = arith.divf %56, %57 : vector<8x128xf32>
      %59 = arith.addf %48, %51 : vector<8x128xf32>
      %60 = arith.negf %59 : vector<8x128xf32>
      %61 = math.exp %60 : vector<8x128xf32>
      %cst_38 = arith.constant 1.000000e+00 : f32
      %62 = vector.broadcast %cst_38 : f32 to vector<8x128xf32>
      %63 = arith.addf %62, %61 : vector<8x128xf32>
      %64 = arith.divf %62, %63 : vector<8x128xf32>
      %c0_39 = arith.constant 0 : index
      %c0_40 = arith.constant 0 : index
      %65 = vector.load %arg9[%c0_39, %c0_40] : memref<1x128xf32, #tpu.memory_space<vmem>>, vector<1x128xf32>
      %66 = vector.broadcast %65 : vector<1x128xf32> to vector<8x128xf32>
      %67 = arith.addf %52, %66 : vector<8x128xf32>
      %68 = arith.mulf %58, %67 : vector<8x128xf32>
      %69 = arith.addf %49, %68 : vector<8x128xf32>
      %70 = math.tanh %69 : vector<8x128xf32>
      %cst_41 = arith.constant 1.000000e+00 : f32
      %71 = vector.broadcast %cst_41 : f32 to vector<8x128xf32>
      %72 = arith.subf %71, %64 : vector<8x128xf32>
      %73 = arith.mulf %72, %70 : vector<8x128xf32>
      %74 = arith.mulf %64, %arg18 : vector<8x128xf32>
      %75 = arith.addf %73, %74 : vector<8x128xf32>
      %cst_42 = arith.constant 0.000000e+00 : f32
      %76 = vector.broadcast %cst_42 : f32 to vector<8x1xf32>
      %77 = arith.cmpf ogt, %40, %76 : vector<8x1xf32>
      %78 = vector.shape_cast %77 : vector<8x1xi1> to vector<8x1xi1>
      %79 = vector.broadcast %78 : vector<8x1xi1> to vector<8x128xi1>
      %80 = arith.select %79, %75, %arg18 : vector<8x128xi1>, vector<8x128xf32>
      %81 = arith.truncf %arg19 : vector<8x128xf32> to vector<8x128xbf16>
      %c0_43 = arith.constant 0 : index
      %c0_44 = arith.constant 0 : index
      %82 = vector.load %arg8[%c0_43, %c0_44] : memref<128x384xbf16, #tpu.memory_space<vmem>>, vector<128x384xbf16>
      %cst_45 = arith.constant dense<0.000000e+00> : vector<8x384xf32>
      %83 = tpu.matmul %81, %82, %cst_45 {dimension_numbers = #tpu.dot_dimension_numbers<[1], [0], [0], [1], [0, 0, 1, 1], [], []>} : vector<8x128xbf16>, vector<128x384xbf16>, vector<8x384xf32> -> vector<8x384xf32>
      %84 = vector.extract_strided_slice %37 {offsets = [0, 0], sizes = [8, 128], strides = [1, 1]} : vector<8x384xf32> to vector<8x128xf32>
      %85 = vector.extract_strided_slice %37 {offsets = [0, 128], sizes = [8, 128], strides = [1, 1]} : vector<8x384xf32> to vector<8x128xf32>
      %86 = vector.extract_strided_slice %37 {offsets = [0, 256], sizes = [8, 128], strides = [1, 1]} : vector<8x384xf32> to vector<8x128xf32>
      %87 = vector.extract_strided_slice %83 {offsets = [0, 0], sizes = [8, 128], strides = [1, 1]} : vector<8x384xf32> to vector<8x128xf32>
      %88 = vector.extract_strided_slice %83 {offsets = [0, 128], sizes = [8, 128], strides = [1, 1]} : vector<8x384xf32> to vector<8x128xf32>
      %89 = vector.extract_strided_slice %83 {offsets = [0, 256], sizes = [8, 128], strides = [1, 1]} : vector<8x384xf32> to vector<8x128xf32>
      %90 = arith.addf %84, %87 : vector<8x128xf32>
      %91 = arith.negf %90 : vector<8x128xf32>
      %92 = math.exp %91 : vector<8x128xf32>
      %cst_46 = arith.constant 1.000000e+00 : f32
      %93 = vector.broadcast %cst_46 : f32 to vector<8x128xf32>
      %94 = arith.addf %93, %92 : vector<8x128xf32>
      %95 = arith.divf %93, %94 : vector<8x128xf32>
      %96 = arith.addf %85, %88 : vector<8x128xf32>
      %97 = arith.negf %96 : vector<8x128xf32>
      %98 = math.exp %97 : vector<8x128xf32>
      %cst_47 = arith.constant 1.000000e+00 : f32
      %99 = vector.broadcast %cst_47 : f32 to vector<8x128xf32>
      %100 = arith.addf %99, %98 : vector<8x128xf32>
      %101 = arith.divf %99, %100 : vector<8x128xf32>
      %c0_48 = arith.constant 0 : index
      %c0_49 = arith.constant 0 : index
      %102 = vector.load %arg10[%c0_48, %c0_49] : memref<1x128xf32, #tpu.memory_space<vmem>>, vector<1x128xf32>
      %103 = vector.broadcast %102 : vector<1x128xf32> to vector<8x128xf32>
      %104 = arith.addf %89, %103 : vector<8x128xf32>
      %105 = arith.mulf %95, %104 : vector<8x128xf32>
      %106 = arith.addf %86, %105 : vector<8x128xf32>
      %107 = math.tanh %106 : vector<8x128xf32>
      %cst_50 = arith.constant 1.000000e+00 : f32
      %108 = vector.broadcast %cst_50 : f32 to vector<8x128xf32>
      %109 = arith.subf %108, %101 : vector<8x128xf32>
      %110 = arith.mulf %109, %107 : vector<8x128xf32>
      %111 = arith.mulf %101, %arg19 : vector<8x128xf32>
      %112 = arith.addf %110, %111 : vector<8x128xf32>
      %cst_51 = arith.constant 0.000000e+00 : f32
      %113 = vector.broadcast %cst_51 : f32 to vector<8x1xf32>
      %114 = arith.cmpf ogt, %43, %113 : vector<8x1xf32>
      %115 = vector.shape_cast %114 : vector<8x1xi1> to vector<8x1xi1>
      %116 = vector.broadcast %115 : vector<8x1xi1> to vector<8x128xi1>
      %117 = arith.select %116, %112, %arg19 : vector<8x128xi1>, vector<8x128xf32>
      %cst_52 = arith.constant 0.000000e+00 : f32
      %118 = vector.broadcast %cst_52 : f32 to vector<8x1xf32>
      %119 = arith.cmpf ogt, %40, %118 : vector<8x1xf32>
      %cst_53 = arith.constant 0.000000e+00 : f32
      %120 = vector.shape_cast %119 : vector<8x1xi1> to vector<8x1xi1>
      %121 = vector.broadcast %120 : vector<8x1xi1> to vector<8x128xi1>
      %122 = vector.broadcast %cst_53 : f32 to vector<8x128xf32>
      %123 = arith.select %121, %80, %122 : vector<8x128xi1>, vector<8x128xf32>
      %124 = arith.index_cast %arg17 : i32 to index
      %c0_54 = arith.constant 0 : index
      %c0_55 = arith.constant 0 : index
      %125 = vector.load %arg11[%124, %c0_54, %c0_55] : memref<8x8x128xf32, #tpu.memory_space<vmem>>, vector<1x8x128xf32>
      %126 = vector.shape_cast %125 : vector<1x8x128xf32> to vector<8x128xf32>
      %127 = vector.shape_cast %123 : vector<8x128xf32> to vector<1x8x128xf32>
      tpu.vector_store %arg11[%124, %c0_54, %c0_55], %127 {strides = array<i32>} : memref<8x8x128xf32, #tpu.memory_space<vmem>>, vector<1x8x128xf32>,
      %cst_56 = arith.constant 0.000000e+00 : f32
      %128 = vector.broadcast %cst_56 : f32 to vector<8x1xf32>
      %129 = arith.cmpf ogt, %43, %128 : vector<8x1xf32>
      %cst_57 = arith.constant 0.000000e+00 : f32
      %130 = vector.shape_cast %129 : vector<8x1xi1> to vector<8x1xi1>
      %131 = vector.broadcast %130 : vector<8x1xi1> to vector<8x128xi1>
      %132 = vector.broadcast %cst_57 : f32 to vector<8x128xf32>
      %133 = arith.select %131, %117, %132 : vector<8x128xi1>, vector<8x128xf32>
      %134 = arith.index_cast %29 : i32 to index
      %c0_58 = arith.constant 0 : index
      %c0_59 = arith.constant 0 : index
      %135 = vector.load %arg12[%134, %c0_58, %c0_59] : memref<8x8x128xf32, #tpu.memory_space<vmem>>, vector<1x8x128xf32>
      %136 = vector.shape_cast %135 : vector<1x8x128xf32> to vector<8x128xf32>
      %137 = vector.shape_cast %133 : vector<8x128xf32> to vector<1x8x128xf32>
      tpu.vector_store %arg12[%134, %c0_58, %c0_59], %137 {strides = array<i32>} : memref<8x8x128xf32, #tpu.memory_space<vmem>>, vector<1x8x128xf32>,
      scf.yield %80, %117 : vector<8x128xf32>, vector<8x128xf32>
    }
    %c0_19 = arith.constant 0 : index
    %c0_20 = arith.constant 0 : index
    %23 = vector.load %arg13[%c0_19, %c0_20] : memref<8x128xf32, #tpu.memory_space<vmem>>, vector<8x128xf32>
    tpu.vector_store %arg13[%c0_19, %c0_20], %22#0 {strides = array<i32>} : memref<8x128xf32, #tpu.memory_space<vmem>>, vector<8x128xf32>,
    %c0_21 = arith.constant 0 : index
    %c0_22 = arith.constant 0 : index
    %24 = vector.load %arg14[%c0_21, %c0_22] : memref<8x128xf32, #tpu.memory_space<vmem>>, vector<8x128xf32>
    tpu.vector_store %arg14[%c0_21, %c0_22], %22#1 {strides = array<i32>} : memref<8x128xf32, #tpu.memory_space<vmem>>, vector<8x128xf32>,
    %c8_i32 = arith.constant 8 : i32
    %c0_i32_23 = arith.constant 0 : i32
    %25 = arith.subi %c8_i32, %18 : i32
    %26 = arith.addi %18, %25 : i32
    %c1_i32_24 = arith.constant 1 : i32
    %27 = scf.for %arg17 = %18 to %26 step %c1_i32_24 iter_args(%arg18 = %c0_i32_23) -> (i32)  : i32 {
      %cst_25 = arith.constant 0.000000e+00 : f32
      %28 = vector.broadcast %cst_25 : f32 to vector<8x128xf32>
      %29 = arith.index_cast %arg17 : i32 to index
      %c0_26 = arith.constant 0 : index
      %c0_27 = arith.constant 0 : index
      %30 = vector.load %arg11[%29, %c0_26, %c0_27] : memref<8x8x128xf32, #tpu.memory_space<vmem>>, vector<1x8x128xf32>
      %31 = vector.shape_cast %30 : vector<1x8x128xf32> to vector<8x128xf32>
      %32 = vector.shape_cast %28 : vector<8x128xf32> to vector<1x8x128xf32>
      tpu.vector_store %arg11[%29, %c0_26, %c0_27], %32 {strides = array<i32>} : memref<8x8x128xf32, #tpu.memory_space<vmem>>, vector<1x8x128xf32>,
      %33 = arith.index_cast %arg17 : i32 to index
      %c0_28 = arith.constant 0 : index
      %c0_29 = arith.constant 0 : index
      %34 = vector.load %arg12[%33, %c0_28, %c0_29] : memref<8x8x128xf32, #tpu.memory_space<vmem>>, vector<1x8x128xf32>
      %35 = vector.shape_cast %34 : vector<1x8x128xf32> to vector<8x128xf32>
      %36 = vector.shape_cast %28 : vector<8x128xf32> to vector<1x8x128xf32>
      tpu.vector_store %arg12[%33, %c0_28, %c0_29], %36 {strides = array<i32>} : memref<8x8x128xf32, #tpu.memory_space<vmem>>, vector<1x8x128xf32>,
      %c0_i32_30 = arith.constant 0 : i32
      scf.yield %c0_i32_30 : i32
    }
    return
  }
}

</mosaic_0001>

<bundles_post_ra>
// kernel: tpu_custom_call.1
= control target key start
LH: loop header
LB: loop body
LE: loop exit
PB: predicated region body
PF: predicated region fallthrough
CT: control target
= control target key end

     0   :  { %21 = vsyncpa [#allocation6], 0  ;;  %s2581_s0 = inlined_call_operand.<no memory space> [shape: s32[1], index: 0, kind: input, shape index: {}]   ;;  %s2582_s1 = inlined_call_operand.vmem [shape: bf16[8,8,128], index: 1, kind: input, shape index: {}]   ;;  %s2583_s2 = inlined_call_operand.vmem [shape: f32[8,8,1], index: 2, kind: input, shape index: {}]   ;;  %s2584_s3 = inlined_call_operand.hbm [shape: bf16[128,384], index: 3, kind: input, shape index: {}]   ;;  %s2585_s4 = inlined_call_operand.hbm [shape: bf16[128,384], index: 4, kind: input, shape index: {}]   ;;  %s2586_s5 = inlined_call_operand.vmem [shape: f32[1,384], index: 5, kind: input, shape index: {}]   ;;  %s2587_s6 = inlined_call_operand.vmem [shape: f32[1,384], index: 6, kind: input, shape index: {}]   ;;  %s2588_s7 = inlined_call_operand.hbm [shape: bf16[128,384], index: 7, kind: input, shape index: {}]   ;;  %s2589_s8 = inlined_call_operand.hbm [shape: bf16[128,384], index: 8, kind: input, shape index: {}]   ;;  %s2590_s9 = inlined_call_operand.vmem [shape: f32[1,128], index: 9, kind: input, shape index: {}]   ;;  %s2591_s10 = inlined_call_operand.vmem [shape: f32[1,128], index: 10, kind: input, shape index: {}]   ;;  %s2592_s11 = inlined_call_operand.hbm [shape: f32[8,8,128], index: 11, kind: output, shape index: {0}]   ;;  %s2593_s12 = inlined_call_operand.hbm [shape: f32[8,8,128], index: 12, kind: output, shape index: {1}]   ;;  %s2594_s13 = inlined_call_operand.hbm [shape: f32[8,128], index: 13, kind: output, shape index: {2}]   ;;  %s2595_s14 = inlined_call_operand.hbm [shape: f32[8,128], index: 14, kind: output, shape index: {3}]  }
   0x1   :  { %22 = vsyncpa [#allocation9], 0 }
   0x2   :  { %23 = vsyncpa [#allocation12], 0 }
   0x3   :  { %24 = vsyncpa [#allocation7], 0 }
   0x4   :  { %25 = vsyncpa [#allocation15], 0 }
   0x5   :  { %26 = vsyncpa [#allocation18], 0  ;;  %s50_s15 = sshll.u32 %s2585_s4, 4  ;;  %s2253_s16 = smov [#allocation8]   ;;  %s51_s15 = int_to_ptr.hbm [resolvable:$true] %s50_s15 }
   0x6   :  { %s52_s17 = sshll.u32 %s2253_s16, 4  ;;  %s37_s20 = sshll.u32 %s2584_s3, 4  ;;  %s53_s17 = int_to_ptr.vmem [resolvable:$true] %s52_s17  ;;  %s38_s20 = int_to_ptr.hbm [resolvable:$true] %s37_s20 }
   0x7   :  { %s2254_s21 = smov 192   ;;  %s2255_s22 = smov 12  }
   0x8   :  { %58 = dma.hbm_to_vmem [thread:$0]  %s51_s15, 3072, %s53_s17, [#allocation9], %s2254_s21, %s2254_s21, %s2255_s22  }
   0x9   :  { %s2256_s23 = smov [#allocation5]   ;;  %s67_s27 = sshll.u32 %s2588_s7, 4  ;;  %s68_s27 = int_to_ptr.hbm [resolvable:$true] %s67_s27 }
   0xa   :  { %s39_s24 = sshll.u32 %s2256_s23, 4  ;;  %s80_s29 = sshll.u32 %s2589_s8, 4  ;;  %s40_s24 = int_to_ptr.vmem [resolvable:$true] %s39_s24  ;;  %s81_s29 = int_to_ptr.hbm [resolvable:$true] %s80_s29 }
   0xb   :  { %45 = dma.hbm_to_vmem [thread:$0]  %s38_s20, 3072, %s40_s24, [#allocation6], %s2254_s21, %s2254_s21, %s2255_s22  }
   0xc   :  { %s2257_s30 = smov [#allocation10]   ;;  %s2258_s3 = smov [#allocation11]  }
   0xd   :  { %s69_s16 = sshll.u32 %s2257_s30, 4  ;;  %s82_s15 = sshll.u32 %s2258_s3, 4  ;;  %s70_s16 = int_to_ptr.vmem [resolvable:$true] %s69_s16  ;;  %s83_s15 = int_to_ptr.vmem [resolvable:$true] %s82_s15 }
   0xe   :  { %75 = dma.hbm_to_vmem [thread:$0]  %s68_s27, 3072, %s70_s16, [#allocation9], %s2254_s21, %s2254_s21, %s2255_s22  }
   0xf   :  { %88 = dma.hbm_to_vmem [thread:$0]  %s81_s29, 3072, %s83_s15, [#allocation12], %s2254_s21, %s2254_s21, %s2255_s22  }
  0x10   :  { %2217 = dma.done.wait [#allocation6], 3072  }
  0x11   :  { %2218 = vsyncadd [#allocation6], 4294964224 }
  0x12   :  { %2219 = dma.done.wait [#allocation9], 6144  }
  0x13   :  { %2220 = vsyncadd [#allocation9], 4294961152 }
  0x14   :  { %2221 = dma.done.wait [#allocation12], 3072  }
  0x15   :  { %2222 = vsyncadd [#allocation12], 4294964224  ;;  %v1489_v0 = vld [vmem:[#allocation5 + $0xa8] sm:$0xf]  ;;  %v1824_v1 = vld [vmem:[#allocation5 + $0xb0] sm:$0xf0] }
  0x16   :  { %v1823_v2 = vld [vmem:[#allocation5 + $0xac] sm:$0xf]  ;;  %v1490_v3 = vor.u32 %v1824_v1, %v1489_v0  ;;  %v1491_v4 = vld [vmem:[#allocation5 + $0xb4] sm:$0xf0]  ;;  %v1477_v5 = vld [vmem:[#allocation5 + $0x90] sm:$0xf] }
  0x17   :  { %v1821_v6 = vld [vmem:[#allocation5 + $0x98] sm:$0xf0]  ;;  %v1494_v7 = vor.u32 %v1823_v2, %v1491_v4  ;;  %v1820_v8 = vld [vmem:[#allocation5 + $0x94] sm:$0xf]  ;;  %v1479_v9 = vld [vmem:[#allocation5 + $0x9c] sm:$0xf0] }
  0x18   :  { %309 = vmatpush.bf16.msra.mxu0 %v1490_v3  ;;  %1900 = vmatpush.bf16.msra.mxu2 %v1490_v3  ;;  %v1478_v10 = vor.u32 %v1821_v6, %v1477_v5  ;;  %v1482_v11 = vor.u32 %v1820_v8, %v1479_v9  ;;  %v1465_v12 = vld [vmem:[#allocation5 + $0x78] sm:$0xf]  ;;  %v1818_v13 = vld [vmem:[#allocation5 + $0x80] sm:$0xf0]  ;;  %v1817_v14 = vld [vmem:[#allocation5 + $0x7c] sm:$0xf] }
  0x19   :  { %338 = vmatpush.bf16.msra.mxu1 %v1494_v7  ;;  %1908 = vmatpush.bf16.msra.mxu3 %v1494_v7  ;;  %v1467_v15 = vld [vmem:[#allocation5 + $0x84] sm:$0xf0]  ;;  %v1466_v16 = vor.u32 %v1818_v13, %v1465_v12  ;;  %v1453_v18 = vld [vmem:[#allocation5 + $0x60] sm:$0xf]  ;;  %v1815_v19 = vld [vmem:[#allocation5 + $0x68] sm:$0xf0] }
  0x1a   :  { %v1470_v17 = vor.u32 %v1817_v14, %v1467_v15  ;;  %v1814_v20 = vld [vmem:[#allocation5 + $0x64] sm:$0xf]  ;;  %v1455_v21 = vld [vmem:[#allocation5 + $0x6c] sm:$0xf0]  ;;  %v1454_v22 = vor.u32 %v1815_v19, %v1453_v18  ;;  %v1441_v24 = vld [vmem:[#allocation5 + $0x48] sm:$0xf] }
  0x1b   :  { %v1458_v23 = vor.u32 %v1814_v20, %v1455_v21  ;;  %v1812_v25 = vld [vmem:[#allocation5 + $0x50] sm:$0xf0]  ;;  %v1811_v26 = vld [vmem:[#allocation5 + $0x4c] sm:$0xf]  ;;  %v1443_v27 = vld [vmem:[#allocation5 + $0x54] sm:$0xf0] }
  0x1c   :  { %310 = vmatpush.bf16.msra.mxu0 %v1478_v10  ;;  %1901 = vmatpush.bf16.msra.mxu2 %v1478_v10  ;;  %v1442_v28 = vor.u32 %v1812_v25, %v1441_v24  ;;  %v1446_v29 = vor.u32 %v1811_v26, %v1443_v27  ;;  %v1429_v30 = vld [vmem:[#allocation5 + $0x30] sm:$0xf]  ;;  %v1809_v31 = vld [vmem:[#allocation5 + $0x38] sm:$0xf0]  ;;  %v1808_v32 = vld [vmem:[#allocation5 + $0x34] sm:$0xf] }
  0x1d   :  { %339 = vmatpush.bf16.msra.mxu1 %v1482_v11  ;;  %1909 = vmatpush.bf16.msra.mxu3 %v1482_v11  ;;  %v1431_v33 = vld [vmem:[#allocation5 + $0x3c] sm:$0xf0]  ;;  %v1430_v34 = vor.u32 %v1809_v31, %v1429_v30  ;;  %v1417_v36 = vld [vmem:[#allocation5 + $0x18] sm:$0xf]  ;;  %v1806_v37 = vld [vmem:[#allocation5 + $0x20] sm:$0xf0] }
  0x1e   :  { %v1434_v35 = vor.u32 %v1808_v32, %v1431_v33  ;;  %v1805_v38 = vld [vmem:[#allocation5 + $0x1c] sm:$0xf]  ;;  %v1419_v39 = vld [vmem:[#allocation5 + $0x24] sm:$0xf0]  ;;  %v1418_v40 = vor.u32 %v1806_v37, %v1417_v36  ;;  %v1405_v42 = vld [vmem:[#allocation5] sm:$0xf] }
  0x1f   :  { %v1422_v41 = vor.u32 %v1805_v38, %v1419_v39  ;;  %v1803_v43 = vld [vmem:[#allocation5 + $0x8] sm:$0xf0]  ;;  %v1802_v44 = vld [vmem:[#allocation5 + $0x4] sm:$0xf]  ;;  %v1407_v45 = vld [vmem:[#allocation5 + $0xc] sm:$0xf0] }
  0x20   :  { %311 = vmatpush.bf16.msra.mxu0 %v1466_v16  ;;  %1902 = vmatpush.bf16.msra.mxu2 %v1466_v16  ;;  %v1497_v46 = vld [vmem:[#allocation5 + $0xb0] sm:$0xf]  ;;  %v1825_v47 = vld [vmem:[#allocation5 + $0xb8] sm:$0xf0]  ;;  %v1585_v48 = vld [vmem:[#allocation8 + $0xa8] sm:$0xf]  ;;  %v1406_v50 = vor.u32 %v1803_v43, %v1405_v42  ;;  %v1410_v51 = vor.u32 %v1802_v44, %v1407_v45 }
  0x21   :  { %340 = vmatpush.bf16.msra.mxu1 %v1470_v17  ;;  %1910 = vmatpush.bf16.msra.mxu3 %v1470_v17  ;;  %v1848_v49 = vld [vmem:[#allocation8 + $0xb0] sm:$0xf0]  ;;  %v2357_v52 = vld [vmem:[%s2582_s1] sm:$0xff]  ;;  %v1847_v54 = vld [vmem:[#allocation8 + $0xac] sm:$0xf]  ;;  %v1498_v56 = vor.u32 %v1825_v47, %v1497_v46  ;;  %p1595_p0 = scmp.le.s32.totalorder %s2581_s0, 0 }
  0x22   :  { %v2362_v53 = vld [vmem:[%s2582_s1 + $0x10] sm:$0xff]  ;;  %v1587_v55 = vld [vmem:[#allocation8 + $0xb4] sm:$0xf0]  ;;  %v1586_v57 = vor.u32 %v1848_v49, %v1585_v48  ;;  %v1849_v59 = vld [vmem:[#allocation8 + $0xb8] sm:$0xf0]  ;;  %s2455_s26 = smov (!%p1595_p0), 0  }
  0x23   :  { %v1593_v58 = vld [vmem:[#allocation8 + $0xb0] sm:$0xf]  ;;  %v1485_v60 = vld [vmem:[#allocation5 + $0x98] sm:$0xf]  ;;  %v1822_v61 = vld [vmem:[#allocation5 + $0xa0] sm:$0xf0]  ;;  %v1590_v0 = vor.u32 %v1847_v54, %v1587_v55 }
  0x24   :  { %312 = vmatpush.bf16.msra.mxu0 %v1454_v22  ;;  %1903 = vmatpush.bf16.msra.mxu2 %v1454_v22  ;;  %v1573_v62 = vld [vmem:[#allocation8 + $0x90] sm:$0xf]  ;;  %v1845_v63 = vld [vmem:[#allocation8 + $0x98] sm:$0xf0]  ;;  %v1594_v1 = vor.u32 %v1849_v59, %v1593_v58  ;;  %v1844_v2 = vld [vmem:[#allocation8 + $0x94] sm:$0xf]  ;;  %v1486_v4 = vor.u32 %v1822_v61, %v1485_v60 }
  0x25   :  { %341 = vmatpush.bf16.msra.mxu1 %v1458_v23  ;;  %1911 = vmatpush.bf16.msra.mxu3 %v1458_v23  ;;  %v1575_v3 = vld [vmem:[#allocation8 + $0x9c] sm:$0xf0]  ;;  %v1574_v5 = vor.u32 %v1845_v63, %v1573_v62  ;;  %v1581_v6 = vld [vmem:[#allocation8 + $0x98] sm:$0xf]  ;;  %v1846_v7 = vld [vmem:[#allocation8 + $0xa0] sm:$0xf0] }
  0x26   :  { %v1473_v8 = vld [vmem:[#allocation5 + $0x80] sm:$0xf]  ;;  %v1819_v9 = vld [vmem:[#allocation5 + $0x88] sm:$0xf0]  ;;  %v1561_v10 = vld [vmem:[#allocation8 + $0x78] sm:$0xf]  ;;  %v1578_v12 = vor.u32 %v1844_v2, %v1575_v3  ;;  %v1582_v13 = vor.u32 %v1846_v7, %v1581_v6 }
  0x27   :  { %v1842_v11 = vld [vmem:[#allocation8 + $0x80] sm:$0xf0]  ;;  %v1841_v14 = vld [vmem:[#allocation8 + $0x7c] sm:$0xf]  ;;  %v1563_v15 = vld [vmem:[#allocation8 + $0x84] sm:$0xf0]  ;;  %v1474_v16 = vor.u32 %v1819_v9, %v1473_v8 }
  0x28   :  { %313 = vmatpush.bf16.msra.mxu0 %v1442_v28  ;;  %1904 = vmatpush.bf16.msra.mxu2 %v1442_v28  ;;  %v1562_v17 = vor.u32 %v1842_v11, %v1561_v10  ;;  %v1569_v18 = vld [vmem:[#allocation8 + $0x80] sm:$0xf]  ;;  %v1843_v19 = vld [vmem:[#allocation8 + $0x88] sm:$0xf0]  ;;  %v1461_v20 = vld [vmem:[#allocation5 + $0x68] sm:$0xf]  ;;  %v1566_v24 = vor.u32 %v1841_v14, %v1563_v15 }
  0x29   :  { %342 = vmatpush.bf16.msra.mxu1 %v1446_v29  ;;  %1912 = vmatpush.bf16.msra.mxu3 %v1446_v29  ;;  %v1816_v21 = vld [vmem:[#allocation5 + $0x70] sm:$0xf0]  ;;  %v1549_v22 = vld [vmem:[#allocation8 + $0x60] sm:$0xf]  ;;  %v1839_v23 = vld [vmem:[#allocation8 + $0x68] sm:$0xf0]  ;;  %v1570_v25 = vor.u32 %v1843_v19, %v1569_v18 }
  0x2a   :  { %v1838_v26 = vld [vmem:[#allocation8 + $0x64] sm:$0xf]  ;;  %v1551_v27 = vld [vmem:[#allocation8 + $0x6c] sm:$0xf0]  ;;  %v1462_v28 = vor.u32 %v1816_v21, %v1461_v20  ;;  %v1550_v29 = vor.u32 %v1839_v23, %v1549_v22  ;;  %v1557_v30 = vld [vmem:[#allocation8 + $0x68] sm:$0xf] }
  0x2b   :  { %v1840_v31 = vld [vmem:[#allocation8 + $0x70] sm:$0xf0]  ;;  %v1449_v32 = vld [vmem:[#allocation5 + $0x50] sm:$0xf]  ;;  %v1813_v33 = vld [vmem:[#allocation5 + $0x58] sm:$0xf0]  ;;  %v1554_v36 = vor.u32 %v1838_v26, %v1551_v27 }
  0x2c   :  { %314 = vmatpush.bf16.msra.mxu0 %v1430_v34  ;;  %1905 = vmatpush.bf16.msra.mxu2 %v1430_v34  ;;  %v1537_v34 = vld [vmem:[#allocation8 + $0x48] sm:$0xf]  ;;  %v1558_v37 = vor.u32 %v1840_v31, %v1557_v30  ;;  %v2376_v39 = vld [vmem:[%s2582_s1 + $0x18] sm:$0xff]  ;;  %v1450_v42 = vor.u32 %v1813_v33, %v1449_v32  ;;  %v1545_v44 = vld [vmem:[#allocation8 + $0x50] sm:$0xf] }
  0x2d   :  { %343 = vmatpush.bf16.msra.mxu1 %v1434_v35  ;;  %1913 = vmatpush.bf16.msra.mxu3 %v1434_v35  ;;  %v1836_v35 = vld [vmem:[#allocation8 + $0x50] sm:$0xf0]  ;;  %v2371_v38 = vld [vmem:[%s2582_s1 + $0x8] sm:$0xff]  ;;  %v1837_v45 = vld [vmem:[#allocation8 + $0x58] sm:$0xf0] }
  0x2e   :  { %v1538_v43 = vor.u32 %v1836_v35, %v1537_v34  ;;  %v1437_v46 = vld [vmem:[#allocation5 + $0x38] sm:$0xf]  ;;  %v1810_v47 = vld [vmem:[#allocation5 + $0x40] sm:$0xf0]  ;;  %v1525_v48 = vld [vmem:[#allocation8 + $0x30] sm:$0xf] }
  0x2f   :  { %v1833_v49 = vld [vmem:[#allocation8 + $0x38] sm:$0xf0]  ;;  %v1832_v54 = vld [vmem:[#allocation8 + $0x34] sm:$0xf]  ;;  %v1527_v55 = vld [vmem:[#allocation8 + $0x3c] sm:$0xf0] }
  0x30   :  { %315 = vmatpush.bf16.msra.mxu0 %v1418_v40  ;;  %1906 = vmatpush.bf16.msra.mxu2 %v1418_v40  ;;  %v1835_v40 = vld [vmem:[#allocation8 + $0x4c] sm:$0xf]  ;;  %v1533_v58 = vld [vmem:[#allocation8 + $0x38] sm:$0xf]  ;;  %v1834_v59 = vld [vmem:[#allocation8 + $0x40] sm:$0xf0] }
  0x31   :  { %344 = vmatpush.bf16.msra.mxu1 %v1422_v41  ;;  %1914 = vmatpush.bf16.msra.mxu3 %v1422_v41  ;;  %v1539_v41 = vld [vmem:[#allocation8 + $0x54] sm:$0xf0]  ;;  %v1425_v60 = vld [vmem:[#allocation5 + $0x20] sm:$0xf]  ;;  %v1807_v61 = vld [vmem:[#allocation5 + $0x28] sm:$0xf0] }
  0x32   :  { %v1513_v62 = vld [vmem:[#allocation8 + $0x18] sm:$0xf]  ;;  %v1830_v63 = vld [vmem:[#allocation8 + $0x20] sm:$0xf0]  ;;  %v1829_v2 = vld [vmem:[#allocation8 + $0x1c] sm:$0xf] }
  0x33   :  { %v1515_v3 = vld [vmem:[#allocation8 + $0x24] sm:$0xf0]  ;;  %v1521_v6 = vld [vmem:[#allocation8 + $0x20] sm:$0xf]  ;;  %v1831_v7 = vld [vmem:[#allocation8 + $0x28] sm:$0xf0] }
  0x34   :  { %316 = vmatpush.bf16.msra.mxu0 %v1406_v50  ;;  %1907 = vmatpush.bf16.msra.mxu2 %v1406_v50  ;;  %v1542_v50 = vor.u32 %v1835_v40, %v1539_v41  ;;  %v1413_v8 = vld [vmem:[#allocation5 + $0x8] sm:$0xf]  ;;  %v1804_v9 = vld [vmem:[#allocation5 + $0x10] sm:$0xf0]  ;;  %v1501_v10 = vld [vmem:[#allocation8] sm:$0xf] }
  0x35   :  { %345 = vmatpush.bf16.msra.mxu1 %v1410_v51  ;;  %1915 = vmatpush.bf16.msra.mxu3 %v1410_v51  ;;  %v1546_v51 = vor.u32 %v1837_v45, %v1545_v44  ;;  %v1827_v11 = vld [vmem:[#allocation8 + $0x8] sm:$0xf0]  ;;  %v1826_v14 = vld [vmem:[#allocation8 + $0x4] sm:$0xf]  ;;  %v1414_v15 = vor.u32 %v1804_v9, %v1413_v8  ;;  %v1509_v18 = vld [vmem:[#allocation8 + $0x8] sm:$0xf] }
  0x36   :  { %v1828_v19 = vld [vmem:[#allocation8 + $0x10] sm:$0xf0] }
  0x37   :  { %317 = vmatmul.bf16.vlgmr.msra.gmra.mxu0 %v2357_v52  ;;  %327 = vmatmul.bf16.vlgmr.msra.gmra.mxu2 %v2362_v53  ;;  %v1510_v21 = vor.u32 %v1828_v19, %v1509_v18 }
  0x38   :  { %367 = vmatpush.bf16.msrb.mxu2 %v1498_v56  ;;  %346 = vmatmul.bf16.vlgmr.msra.gmra.mxu1 %v2357_v52  ;;  %v1438_v56 = vor.u32 %v1810_v47, %v1437_v46 }
  0x39   :  { %596 = vmatpush.bf16.msrb.mxu3 %v1586_v57  ;;  %625 = vmatpush.bf16.msrb.mxu0 %v1590_v0  ;;  %v1526_v57 = vor.u32 %v1833_v49, %v1525_v48  ;;  %v1530_v0 = vor.u32 %v1832_v54, %v1527_v55 }
  0x3a   :  { %356 = vmatmul.bf16.vlgmr.msra.gmra.mxu3 %v2362_v53  ;;  %654 = vmatpush.bf16.msrb.mxu1 %v1594_v1  ;;  %v1534_v1 = vor.u32 %v1834_v59, %v1533_v58 }
  0x3c   :  { %368 = vmatpush.bf16.msrb.mxu2 %v1486_v4  ;;  %v1426_v4 = vor.u32 %v1807_v61, %v1425_v60  ;;  %v460_v60 = vld [vmem:[%s2587_s6] sm:$0x7] }
  0x3d   :  { %597 = vmatpush.bf16.msrb.mxu3 %v1574_v5  ;;  %626 = vmatpush.bf16.msrb.mxu0 %v1578_v12  ;;  %v1514_v5 = vor.u32 %v1830_v63, %v1513_v62  ;;  %v1518_v12 = vor.u32 %v1829_v2, %v1515_v3  ;;  %v2411_v8 = vperm.slane %v460_v60, 0 }
  0x3e   :  { %655 = vmatpush.bf16.msrb.mxu1 %v1582_v13  ;;  %v1522_v13 = vor.u32 %v1831_v7, %v1521_v6 }
  0x40   :  { %369 = vmatpush.bf16.msrb.mxu2 %v1474_v16  ;;  %v1502_v16 = vor.u32 %v1827_v11, %v1501_v10 }
  0x41   :  { %598 = vmatpush.bf16.msrb.mxu3 %v1562_v17  ;;  %627 = vmatpush.bf16.msrb.mxu0 %v1566_v24  ;;  %v1503_v17 = vld [vmem:[#allocation8 + $0xc] sm:$0xf0] }
  0x42   :  { %656 = vmatpush.bf16.msrb.mxu1 %v1570_v25  ;;  %v1506_v20 = vor.u32 %v1826_v14, %v1503_v17 }
  0x44   :  { %370 = vmatpush.bf16.msrb.mxu2 %v1462_v28 }
  0x45   :  { %599 = vmatpush.bf16.msrb.mxu3 %v1550_v29  ;;  %628 = vmatpush.bf16.msrb.mxu0 %v1554_v36 }
  0x46   :  { %657 = vmatpush.bf16.msrb.mxu1 %v1558_v37 }
  0x47   :  { %322 = vmatmul.bf16.gmra.mxu0 %v2371_v38  ;;  %332 = vmatmul.bf16.gmra.mxu2 %v2376_v39 }
  0x48   :  { %371 = vmatpush.bf16.msrb.mxu2 %v1450_v42  ;;  %351 = vmatmul.bf16.gmra.mxu1 %v2371_v38 }
  0x49   :  { %600 = vmatpush.bf16.msrb.mxu3 %v1538_v43  ;;  %629 = vmatpush.bf16.msrb.mxu0 %v1542_v50 }
  0x4a   :  { %361 = vmatmul.bf16.gmra.mxu3 %v2376_v39  ;;  %658 = vmatpush.bf16.msrb.mxu1 %v1546_v51 }
  0x4c   :  { %372 = vmatpush.bf16.msrb.mxu2 %v1438_v56 }
  0x4d   :  { %601 = vmatpush.bf16.msrb.mxu3 %v1526_v57  ;;  %630 = vmatpush.bf16.msrb.mxu0 %v1530_v0  ;;  %v2404_v0 = vperm.slane %v460_v60, 2 }
  0x4e   :  { %659 = vmatpush.bf16.msrb.mxu1 %v1534_v1 }
  0x50   :  { %373 = vmatpush.bf16.msrb.mxu2 %v1426_v4  ;;  %v2406_v4 = vperm.slane %v460_v60, 1 }
  0x51   :  { %602 = vmatpush.bf16.msrb.mxu3 %v1514_v5  ;;  %631 = vmatpush.bf16.msrb.mxu0 %v1518_v12 }
  0x52   :  { %660 = vmatpush.bf16.msrb.mxu1 %v1522_v13 }
  0x54   :  { %374 = vmatpush.bf16.msrb.mxu2 %v1414_v15 }
  0x55   :  { %603 = vmatpush.bf16.msrb.mxu3 %v1502_v16  ;;  %632 = vmatpush.bf16.msrb.mxu0 %v1506_v20 }
  0x56   :  { %661 = vmatpush.bf16.msrb.mxu1 %v1510_v21 }
  0x57   :  { %375 = vmatmul.bf16.vlgmr.msrb.gmra.mxu2 %v2357_v52 }
  0x58   :  { %633 = vmatmul.bf16.vlgmr.msrb.gmra.mxu0 %v2357_v52 }
  0x59   :  { %662 = vmatmul.bf16.vlgmr.msrb.gmra.mxu1 %v2357_v52 }
  0x5a   :  { %604 = vmatmul.bf16.vlgmr.msrb.gmra.mxu3 %v2357_v52  ;;  %v149_v52 = vld [vmem:[%s2586_s5] sm:$0x7] }
  0x5b   :  { %v151_v22 = vperm.slane %v149_v52, 0  ;;  %v152_v23 = vperm.slane %v149_v52, 1  ;;  %v2409_v7 = vperm.slane %v149_v52, 2 }
  0x67   :  { %380 = vmatmul.bf16.gmra.mxu2 %v2371_v38 }
  0x68   :  { %638 = vmatmul.bf16.gmra.mxu0 %v2371_v38 }
  0x69   :  { %667 = vmatmul.bf16.gmra.mxu1 %v2371_v38 }
  0x6a   :  { %609 = vmatmul.bf16.gmra.mxu3 %v2371_v38 }
  0x77   :  { %385 = vmatmul.bf16.gmra.mxu2 %v2362_v53 }
  0x78   :  { %643 = vmatmul.bf16.gmra.mxu0 %v2362_v53 }
  0x79   :  { %672 = vmatmul.bf16.gmra.mxu1 %v2362_v53 }
  0x7a   :  { %614 = vmatmul.bf16.gmra.mxu3 %v2362_v53 }
  0x87   :  { %390 = vmatmul.bf16.gmra.mxu2 %v2376_v39 }
  0x88   :  { %648 = vmatmul.bf16.gmra.mxu0 %v2376_v39 }
  0x89   :  { %677 = vmatmul.bf16.gmra.mxu1 %v2376_v39 }
  0x8a   :  { %619 = vmatmul.bf16.gmra.mxu3 %v2376_v39 }
  0xb4   :  { %v318_v24 = vpop.f32.mrf.mxu0 }
  0xb5   :  { %v319_v25 = vadd.f32 %v318_v24, %v151_v22  ;;  %v347_v26 = vpop.f32.mrf.mxu1 }
  0xb6   :  { %v348_v27 = vadd.f32 %v347_v26, %v152_v23 }
  0xb8   :  { %v396_v28 = vpack.c.bf16 %v348_v27, %v319_v25 }
  0xba   :  { %412 = vst [vmem:[#allocation2] sm:$0xff] %v396_v28  ;;  %v328_v53 = vpop.f32.mrf.mxu2 }
  0xbb   :  { %v329_v29 = vadd.f32 %v328_v53, %v151_v22 }
  0xbc   :  { %v320_v32 = vpop.f32.mrf.mxu0 }
  0xbd   :  { %v357_v30 = vpop.f32.mrf.mxu3  ;;  %v321_v33 = vadd.f32 %v320_v32, %v151_v22  ;;  %v349_v34 = vpop.f32.mrf.mxu1 }
  0xbe   :  { %v358_v31 = vadd.f32 %v357_v30, %v152_v23  ;;  %v350_v36 = vadd.f32 %v349_v34, %v152_v23 }
  0xc0   :  { %v404_v35 = vpack.c.bf16 %v358_v31, %v329_v29  ;;  %v398_v37 = vpack.c.bf16 %v350_v36, %v321_v33 }
  0xc2   :  { %420 = vst [vmem:[#allocation2 + $0x30] sm:$0xff] %v404_v35  ;;  %v330_v38 = vpop.f32.mrf.mxu2 }
  0xc3   :  { %414 = vst [vmem:[#allocation2 + $0xc] sm:$0xff] %v398_v37  ;;  %v331_v39 = vadd.f32 %v330_v38, %v151_v22 }
  0xc4   :  { %v323_v42 = vpop.f32.mrf.mxu0 }
  0xc5   :  { %v359_v40 = vpop.f32.mrf.mxu3  ;;  %v324_v43 = vadd.f32 %v323_v42, %v151_v22  ;;  %v352_v44 = vpop.f32.mrf.mxu1 }
  0xc6   :  { %v360_v41 = vadd.f32 %v359_v40, %v152_v23  ;;  %v353_v46 = vadd.f32 %v352_v44, %v152_v23 }
  0xc8   :  { %v406_v45 = vpack.c.bf16 %v360_v41, %v331_v39  ;;  %v400_v47 = vpack.c.bf16 %v353_v46, %v324_v43 }
  0xca   :  { %422 = vst [vmem:[#allocation2 + $0x3c] sm:$0xff] %v406_v45  ;;  %v333_v48 = vpop.f32.mrf.mxu2 }
  0xcb   :  { %416 = vst [vmem:[#allocation2 + $0x18] sm:$0xff] %v400_v47  ;;  %v334_v49 = vadd.f32 %v333_v48, %v151_v22 }
  0xcc   :  { %v325_v54 = vpop.f32.mrf.mxu0 }
  0xcd   :  { %v362_v50 = vpop.f32.mrf.mxu3  ;;  %v326_v55 = vadd.f32 %v325_v54, %v151_v22  ;;  %v354_v56 = vpop.f32.mrf.mxu1 }
  0xce   :  { %v363_v51 = vadd.f32 %v362_v50, %v152_v23  ;;  %v355_v58 = vadd.f32 %v354_v56, %v152_v23 }
  0xd0   :  { %v408_v57 = vpack.c.bf16 %v363_v51, %v334_v49  ;;  %v402_v59 = vpack.c.bf16 %v355_v58, %v326_v55 }
  0xd2   :  { %424 = vst [vmem:[#allocation2 + $0x48] sm:$0xff] %v408_v57  ;;  %v335_v61 = vpop.f32.mrf.mxu2 }
  0xd3   :  { %418 = vst [vmem:[#allocation2 + $0x24] sm:$0xff] %v402_v59  ;;  %v336_v62 = vadd.f32 %v335_v61, %v151_v22 }
  0xd5   :  { %v364_v63 = vpop.f32.mrf.mxu3  ;;  %v634_v2 = vpop.f32.mrf.mxu0 }
  0xd6   :  { %v365_v1 = vadd.f32 %v364_v63, %v152_v23  ;;  %v663_v5 = vpop.f32.mrf.mxu1  ;;  %v635_v10 = vadd.f32 %v634_v2, %v2406_v4 }
  0xd7   :  { %v664_v6 = vadd.f32 %v663_v5, %v2404_v0 }
  0xd8   :  { %v410_v3 = vpack.c.bf16 %v365_v1, %v336_v62 }
  0xd9   :  { %v684_v9 = vpack.c.bf16 %v664_v6, %v664_v6 }
  0xda   :  { %426 = vst [vmem:[#allocation2 + $0x54] sm:$0xff] %v410_v3  ;;  %v376_v11 = vpop.f32.mrf.mxu2 }
  0xdb   :  { %700 = vst [vmem:[#allocation3 + $0x8] sm:$0xf] %v684_v9  ;;  %v377_v12 = vadd.f32 %v376_v11, %v2409_v7 }
  0xdd   :  { %v605_v13 = vpop.f32.mrf.mxu3  ;;  %v397_v15 = vpack.c.bf16 %v377_v12, %v377_v12  ;;  %v636_v16 = vpop.f32.mrf.mxu0 }
  0xde   :  { %v606_v14 = vadd.f32 %v605_v13, %v2411_v8  ;;  %v665_v18 = vpop.f32.mrf.mxu1  ;;  %v637_v23 = vadd.f32 %v636_v16, %v2406_v4 }
  0xdf   :  { %413 = vst [vmem:[#allocation2 + $0x8] sm:$0xf] %v397_v15  ;;  %v666_v19 = vadd.f32 %v665_v18, %v2404_v0 }
  0xe0   :  { %v683_v17 = vpack.c.bf16 %v635_v10, %v606_v14 }
  0xe1   :  { %v686_v20 = vpack.c.bf16 %v666_v19, %v666_v19 }
  0xe2   :  { %699 = vst [vmem:[#allocation3] sm:$0xff] %v683_v17  ;;  %v378_v21 = vpop.f32.mrf.mxu2 }
  0xe3   :  { %702 = vst [vmem:[#allocation3 + $0x14] sm:$0xf] %v686_v20  ;;  %v379_v52 = vadd.f32 %v378_v21, %v2409_v7 }
  0xe5   :  { %v607_v22 = vpop.f32.mrf.mxu3  ;;  %v399_v25 = vpack.c.bf16 %v379_v52, %v379_v52  ;;  %v639_v26 = vpop.f32.mrf.mxu0 }
  0xe6   :  { %v608_v24 = vadd.f32 %v607_v22, %v2411_v8  ;;  %v668_v28 = vpop.f32.mrf.mxu1  ;;  %v640_v30 = vadd.f32 %v639_v26, %v2406_v4 }
  0xe7   :  { %415 = vst [vmem:[#allocation2 + $0x14] sm:$0xf] %v399_v25  ;;  %v669_v53 = vadd.f32 %v668_v28, %v2404_v0 }
  0xe8   :  { %v685_v27 = vpack.c.bf16 %v637_v23, %v608_v24 }
  0xe9   :  { %v688_v29 = vpack.c.bf16 %v669_v53, %v669_v53 }
  0xea   :  { %701 = vst [vmem:[#allocation3 + $0xc] sm:$0xff] %v685_v27  ;;  %v381_v31 = vpop.f32.mrf.mxu2 }
  0xeb   :  { %704 = vst [vmem:[#allocation3 + $0x20] sm:$0xf] %v688_v29  ;;  %v382_v32 = vadd.f32 %v381_v31, %v2409_v7 }
  0xed   :  { %v610_v33 = vpop.f32.mrf.mxu3  ;;  %v401_v35 = vpack.c.bf16 %v382_v32, %v382_v32  ;;  %v641_v36 = vpop.f32.mrf.mxu0  ;;  %v2449_v32 = vmov 0.0  }
  0xee   :  { %v611_v34 = vadd.f32 %v610_v33, %v2411_v8  ;;  %v670_v38 = vpop.f32.mrf.mxu1  ;;  %v642_v44 = vadd.f32 %v641_v36, %v2406_v4 }
  0xef   :  { %417 = vst [vmem:[#allocation2 + $0x20] sm:$0xf] %v401_v35  ;;  %v671_v39 = vadd.f32 %v670_v38, %v2404_v0 }
  0xf0   :  { %v687_v37 = vpack.c.bf16 %v640_v30, %v611_v34 }
  0xf1   :  { %v690_v40 = vpack.c.bf16 %v671_v39, %v671_v39 }
  0xf2   :  { %703 = vst [vmem:[#allocation3 + $0x18] sm:$0xff] %v687_v37  ;;  %v383_v41 = vpop.f32.mrf.mxu2 }
  0xf3   :  { %706 = vst [vmem:[#allocation3 + $0x2c] sm:$0xf] %v690_v40  ;;  %v384_v42 = vadd.f32 %v383_v41, %v2409_v7 }
  0xf5   :  { %v612_v43 = vpop.f32.mrf.mxu3  ;;  %v403_v46 = vpack.c.bf16 %v384_v42, %v384_v42  ;;  %v644_v47 = vpop.f32.mrf.mxu0 }
  0xf6   :  { %v613_v45 = vadd.f32 %v612_v43, %v2411_v8  ;;  %v673_v49 = vpop.f32.mrf.mxu1  ;;  %v645_v54 = vadd.f32 %v644_v47, %v2406_v4 }
  0xf7   :  { %419 = vst [vmem:[#allocation2 + $0x2c] sm:$0xf] %v403_v46  ;;  %v674_v50 = vadd.f32 %v673_v49, %v2404_v0 }
  0xf8   :  { %v689_v48 = vpack.c.bf16 %v642_v44, %v613_v45 }
  0xf9   :  { %v692_v51 = vpack.c.bf16 %v674_v50, %v674_v50 }
  0xfa   :  { %705 = vst [vmem:[#allocation3 + $0x24] sm:$0xff] %v689_v48  ;;  %v386_v55 = vpop.f32.mrf.mxu2 }
  0xfb   :  { %708 = vst [vmem:[#allocation3 + $0x38] sm:$0xf] %v692_v51  ;;  %v387_v56 = vadd.f32 %v386_v55, %v2409_v7 }
  0xfd   :  { %v615_v57 = vpop.f32.mrf.mxu3  ;;  %v405_v59 = vpack.c.bf16 %v387_v56, %v387_v56  ;;  %v646_v60 = vpop.f32.mrf.mxu0 }
  0xfe   :  { %v616_v58 = vadd.f32 %v615_v57, %v2411_v8  ;;  %v675_v62 = vpop.f32.mrf.mxu1  ;;  %v647_v6 = vadd.f32 %v646_v60, %v2406_v4 }
  0xff   :  { %421 = vst [vmem:[#allocation2 + $0x38] sm:$0xf] %v405_v59  ;;  %v676_v63 = vadd.f32 %v675_v62, %v2404_v0 }
 0x100   :  { %v691_v61 = vpack.c.bf16 %v645_v54, %v616_v58 }
 0x101   :  { %v694_v1 = vpack.c.bf16 %v676_v63, %v676_v63 }
 0x102   :  { %707 = vst [vmem:[#allocation3 + $0x30] sm:$0xff] %v691_v61  ;;  %v388_v2 = vpop.f32.mrf.mxu2 }
 0x103   :  { %710 = vst [vmem:[#allocation3 + $0x44] sm:$0xf] %v694_v1  ;;  %v389_v3 = vadd.f32 %v388_v2, %v2409_v7 }
 0x105   :  { %v617_v5 = vpop.f32.mrf.mxu3  ;;  %v407_v10 = vpack.c.bf16 %v389_v3, %v389_v3  ;;  %v649_v13 = vpop.f32.mrf.mxu0 }
 0x106   :  { %v618_v9 = vadd.f32 %v617_v5, %v2411_v8  ;;  %v678_v12 = vpop.f32.mrf.mxu1  ;;  %v650_v16 = vadd.f32 %v649_v13, %v2406_v4 }
 0x107   :  { %423 = vst [vmem:[#allocation2 + $0x44] sm:$0xf] %v407_v10  ;;  %v679_v14 = vadd.f32 %v678_v12, %v2404_v0 }
 0x108   :  { %v693_v11 = vpack.c.bf16 %v647_v6, %v618_v9 }
 0x109   :  { %v696_v15 = vpack.c.bf16 %v679_v14, %v679_v14 }
 0x10a   :  { %709 = vst [vmem:[#allocation3 + $0x3c] sm:$0xff] %v693_v11  ;;  %v391_v17 = vpop.f32.mrf.mxu2 }
 0x10b   :  { %712 = vst [vmem:[#allocation3 + $0x50] sm:$0xf] %v696_v15  ;;  %v392_v18 = vadd.f32 %v391_v17, %v2409_v7 }
 0x10d   :  { %v620_v19 = vpop.f32.mrf.mxu3  ;;  %v409_v21 = vpack.c.bf16 %v392_v18, %v392_v18  ;;  %v651_v24 = vpop.f32.mrf.mxu0 }
 0x10e   :  { %v621_v20 = vadd.f32 %v620_v19, %v2411_v8  ;;  %v680_v22 = vpop.f32.mrf.mxu1  ;;  %v652_v53 = vadd.f32 %v651_v24, %v2406_v4 }
 0x10f   :  { %425 = vst [vmem:[#allocation2 + $0x50] sm:$0xf] %v409_v21  ;;  %v681_v23 = vadd.f32 %v680_v22, %v2404_v0  ;;  %v2447_v0 = vmov 0.0  }
 0x110   :  { %v695_v52 = vpack.c.bf16 %v650_v16, %v621_v20 }
 0x111   :  { %v698_v25 = vpack.c.bf16 %v681_v23, %v681_v23 }
 0x112   :  { %711 = vst [vmem:[#allocation3 + $0x48] sm:$0xff] %v695_v52  ;;  %v393_v26 = vpop.f32.mrf.mxu2 }
 0x113   :  { %714 = vst [vmem:[#allocation3 + $0x5c] sm:$0xf] %v698_v25  ;;  %v394_v27 = vadd.f32 %v393_v26, %v2409_v7 }
 0x115   :  { %v622_v28 = vpop.f32.mrf.mxu3  ;;  %v411_v30 = vpack.c.bf16 %v394_v27, %v394_v27 }
 0x116   :  { %v623_v29 = vadd.f32 %v622_v28, %v2411_v8  ;;  %1375 = sbr.rel (%p1595_p0) target bundleno = 514 (0x202), region = 120 }
 0x117   :  { %427 = vst [vmem:[#allocation2 + $0x5c] sm:$0xf] %v411_v30 }
 0x118   :  { %v697_v31 = vpack.c.bf16 %v652_v53, %v623_v29 }
 0x11a   :  { %713 = vst [vmem:[#allocation3 + $0x54] sm:$0xff] %v697_v31 }
 0x11b   :  { %v2451_v33 = vmov 0.0   ;;  %v2453_v7 = vmov 0.0  }
 0x11c LB: > { %v1687_v4 = vld [vmem:[#allocation10 + $0xa8] sm:$0xf]  ;;  %v1874_v8 = vld [vmem:[#allocation10 + $0xb0] sm:$0xf0]  ;;  %v1675_v37 = vld [vmem:[#allocation10 + $0x90] sm:$0xf]  ;;  %s2239_s26 = sphi %s2455_s26, %s719_s26   ;;  %v2235_v7 = vphi %v2453_v7, %v2603_v7   ;;  %v2231_v33 = vphi %v2451_v33, %v2602_v33  }
 0x11d   : > { %v1785_v34 = vld [vmem:[#allocation11 + $0xa8] sm:$0xf]  ;;  %v1688_v35 = vor.u32 %v1874_v8, %v1687_v4  ;;  %v1898_v36 = vld [vmem:[#allocation11 + $0xb0] sm:$0xf0]  ;;  %v1871_v38 = vld [vmem:[#allocation10 + $0x98] sm:$0xf0] }
 0x11e   : > { %v1786_v39 = vor.u32 %v1898_v36, %v1785_v34  ;;  %v1773_v40 = vld [vmem:[#allocation11 + $0x90] sm:$0xf]  ;;  %v1895_v41 = vld [vmem:[#allocation11 + $0x98] sm:$0xf0]  ;;  %v1873_v42 = vld [vmem:[#allocation10 + $0xac] sm:$0xf]  ;;  %v1676_v43 = vor.u32 %v1871_v38, %v1675_v37 }
 0x11f   : > { %909 = vmatpush.bf16.msra.mxu0 %v1688_v35  ;;  %v1689_v44 = vld [vmem:[#allocation10 + $0xb4] sm:$0xf0]  ;;  %v1774_v45 = vor.u32 %v1895_v41, %v1773_v40  ;;  %v1868_v48 = vld [vmem:[#allocation10 + $0x80] sm:$0xf0]  ;;  %v1870_v49 = vld [vmem:[#allocation10 + $0x94] sm:$0xf] }
 0x120   : > { %1168 = vmatpush.bf16.msra.mxu3 %v1786_v39  ;;  %v1692_v46 = vor.u32 %v1873_v42, %v1689_v44  ;;  %v1663_v47 = vld [vmem:[#allocation10 + $0x78] sm:$0xf]  ;;  %v1892_v51 = vld [vmem:[#allocation11 + $0x80] sm:$0xf0]  ;;  %v1677_v54 = vld [vmem:[#allocation10 + $0x9c] sm:$0xf0] }
 0x121   : > { %v1761_v50 = vld [vmem:[#allocation11 + $0x78] sm:$0xf]  ;;  %v1680_v55 = vor.u32 %v1870_v49, %v1677_v54  ;;  %v1664_v56 = vor.u32 %v1868_v48, %v1663_v47  ;;  %v1867_v57 = vld [vmem:[#allocation10 + $0x7c] sm:$0xf]  ;;  %v1665_v58 = vld [vmem:[#allocation10 + $0x84] sm:$0xf0] }
 0x122   : > { %922 = vmatpush.bf16.msra.mxu1 %v1692_v46  ;;  %v1762_v59 = vor.u32 %v1892_v51, %v1761_v50  ;;  %v1651_v60 = vld [vmem:[#allocation10 + $0x60] sm:$0xf]  ;;  %v1865_v61 = vld [vmem:[#allocation10 + $0x68] sm:$0xf0]  ;;  %v1668_v1 = vor.u32 %v1867_v57, %v1665_v58  ;;  %v1864_v2 = vld [vmem:[#allocation10 + $0x64] sm:$0xf] }
 0x123   : > { %910 = vmatpush.bf16.msra.mxu0 %v1676_v43  ;;  %v1749_v62 = vld [vmem:[#allocation11 + $0x60] sm:$0xf]  ;;  %v1889_v63 = vld [vmem:[#allocation11 + $0x68] sm:$0xf0]  ;;  %v1652_v3 = vor.u32 %v1865_v61, %v1651_v60  ;;  %v1653_v5 = vld [vmem:[#allocation10 + $0x6c] sm:$0xf0] }
 0x124   : > { %1169 = vmatpush.bf16.msra.mxu3 %v1774_v45  ;;  %v1695_v6 = vld [vmem:[#allocation10 + $0xb0] sm:$0xf]  ;;  %v1875_v9 = vld [vmem:[#allocation10 + $0xb8] sm:$0xf0]  ;;  %v1750_v10 = vor.u32 %v1889_v63, %v1749_v62  ;;  %v1639_v11 = vld [vmem:[#allocation10 + $0x48] sm:$0xf]  ;;  %v1656_v16 = vor.u32 %v1864_v2, %v1653_v5  ;;  %v2468_v5 = vpack.c.bf16 %v2235_v7, %v2235_v7 }
 0x125   : > { %v1862_v12 = vld [vmem:[#allocation10 + $0x50] sm:$0xf0]  ;;  %v1696_v13 = vor.u32 %v1875_v9, %v1695_v6  ;;  %v1737_v14 = vld [vmem:[#allocation11 + $0x48] sm:$0xf]  ;;  %v1683_v17 = vld [vmem:[#allocation10 + $0x98] sm:$0xf]  ;;  %v2472_v9 = vpack.c.bf16 %v2231_v33, %v2231_v33 }
 0x126   : > { %923 = vmatpush.bf16.msra.mxu1 %v1680_v55  ;;  %v1886_v15 = vld [vmem:[#allocation11 + $0x50] sm:$0xf0]  ;;  %v1872_v18 = vld [vmem:[#allocation10 + $0xa0] sm:$0xf0]  ;;  %v1640_v19 = vor.u32 %v1862_v12, %v1639_v11  ;;  %v1861_v20 = vld [vmem:[#allocation10 + $0x4c] sm:$0xf] }
 0x127   : > { %911 = vmatpush.bf16.msra.mxu0 %v1664_v56  ;;  %935 = vmatpush.bf16.msra.mxu2 %v1696_v13  ;;  %v1641_v21 = vld [vmem:[#allocation10 + $0x54] sm:$0xf0]  ;;  %v1684_v52 = vor.u32 %v1872_v18, %v1683_v17  ;;  %v1738_v22 = vor.u32 %v1886_v15, %v1737_v14  ;;  %v1627_v23 = vld [vmem:[#allocation10 + $0x30] sm:$0xf]  ;;  %v1859_v24 = vld [vmem:[#allocation10 + $0x38] sm:$0xf0] }
 0x128   : > { %1170 = vmatpush.bf16.msra.mxu3 %v1762_v59  ;;  %v1725_v25 = vld [vmem:[#allocation11 + $0x30] sm:$0xf]  ;;  %v1883_v26 = vld [vmem:[#allocation11 + $0x38] sm:$0xf0]  ;;  %v1671_v27 = vld [vmem:[#allocation10 + $0x80] sm:$0xf]  ;;  %v1644_v53 = vor.u32 %v1861_v20, %v1641_v21  ;;  %v1628_v31 = vor.u32 %v1859_v24, %v1627_v23 }
 0x129   : > { %v1869_v28 = vld [vmem:[#allocation10 + $0x88] sm:$0xf0]  ;;  %v1858_v29 = vld [vmem:[#allocation10 + $0x34] sm:$0xf]  ;;  %v1629_v0 = vld [vmem:[#allocation10 + $0x3c] sm:$0xf0]  ;;  %v1726_v8 = vor.u32 %v1883_v26, %v1725_v25 }
 0x12a   : > { %924 = vmatpush.bf16.msra.mxu1 %v1668_v1  ;;  %v1672_v30 = vor.u32 %v1869_v28, %v1671_v27  ;;  %v1659_v32 = vld [vmem:[#allocation10 + $0x68] sm:$0xf]  ;;  %v1866_v4 = vld [vmem:[#allocation10 + $0x70] sm:$0xf0]  ;;  %v1615_v34 = vld [vmem:[#allocation10 + $0x18] sm:$0xf]  ;;  %v1632_v38 = vor.u32 %v1858_v29, %v1629_v0 }
 0x12b   : > { %912 = vmatpush.bf16.msra.mxu0 %v1652_v3  ;;  %936 = vmatpush.bf16.msra.mxu2 %v1684_v52  ;;  %v1856_v35 = vld [vmem:[#allocation10 + $0x20] sm:$0xf0]  ;;  %v1713_v36 = vld [vmem:[#allocation11 + $0x18] sm:$0xf]  ;;  %v1855_v39 = vld [vmem:[#allocation10 + $0x1c] sm:$0xf]  ;;  %v1660_v40 = vor.u32 %v1866_v4, %v1659_v32 }
 0x12c   : > { %1171 = vmatpush.bf16.msra.mxu3 %v1750_v10  ;;  %v1880_v37 = vld [vmem:[#allocation11 + $0x20] sm:$0xf0]  ;;  %v1616_v41 = vor.u32 %v1856_v35, %v1615_v34  ;;  %v1617_v42 = vld [vmem:[#allocation10 + $0x24] sm:$0xf0]  ;;  %v1647_v43 = vld [vmem:[#allocation10 + $0x50] sm:$0xf] }
 0x12d   : > { %v1863_v44 = vld [vmem:[#allocation10 + $0x58] sm:$0xf0]  ;;  %v1714_v45 = vor.u32 %v1880_v37, %v1713_v36  ;;  %v1603_v46 = vld [vmem:[#allocation10] sm:$0xf]  ;;  %v1853_v47 = vld [vmem:[#allocation10 + $0x8] sm:$0xf0]  ;;  %v1620_v54 = vor.u32 %v1855_v39, %v1617_v42 }
 0x12e   : > { %925 = vmatpush.bf16.msra.mxu1 %v1656_v16  ;;  %v1701_v48 = vld [vmem:[#allocation11] sm:$0xf]  ;;  %v1877_v49 = vld [vmem:[#allocation11 + $0x8] sm:$0xf0]  ;;  %v1787_v51 = vld [vmem:[#allocation11 + $0xb4] sm:$0xf0]  ;;  %v1648_v55 = vor.u32 %v1863_v44, %v1647_v43  ;;  %v1604_v56 = vor.u32 %v1853_v47, %v1603_v46 }
 0x12f   : > { %913 = vmatpush.bf16.msra.mxu0 %v1640_v19  ;;  %937 = vmatpush.bf16.msra.mxu2 %v1672_v30  ;;  %v1897_v50 = vld [vmem:[#allocation11 + $0xac] sm:$0xf]  ;;  %v1852_v57 = vld [vmem:[#allocation10 + $0x4] sm:$0xf]  ;;  %v1605_v58 = vld [vmem:[#allocation10 + $0xc] sm:$0xf0]  ;;  %v1702_v59 = vor.u32 %v1877_v49, %v1701_v48 }
 0x130   : > { %1172 = vmatpush.bf16.msra.mxu3 %v1738_v22  ;;  %v1790_v60 = vor.u32 %v1897_v50, %v1787_v51  ;;  %v1894_v61 = vld [vmem:[#allocation11 + $0x94] sm:$0xf]  ;;  %v1793_v62 = vld [vmem:[#allocation11 + $0xb0] sm:$0xf]  ;;  %v1899_v63 = vld [vmem:[#allocation11 + $0xb8] sm:$0xf0]  ;;  %v1608_v6 = vor.u32 %v1852_v57, %v1605_v58 }
 0x131   : > { %v1775_v1 = vld [vmem:[#allocation11 + $0x9c] sm:$0xf0]  ;;  %v1635_v2 = vld [vmem:[#allocation10 + $0x38] sm:$0xf]  ;;  %v1860_v3 = vld [vmem:[#allocation10 + $0x40] sm:$0xf0]  ;;  %v1794_v10 = vor.u32 %v1899_v63, %v1793_v62 }
 0x132   : > { %926 = vmatpush.bf16.msra.mxu1 %v1644_v53  ;;  %v1891_v11 = vld [vmem:[#allocation11 + $0x7c] sm:$0xf]  ;;  %v1781_v12 = vld [vmem:[#allocation11 + $0x98] sm:$0xf]  ;;  %v1896_v13 = vld [vmem:[#allocation11 + $0xa0] sm:$0xf0]  ;;  %v1778_v14 = vor.u32 %v1894_v61, %v1775_v1  ;;  %v1636_v15 = vor.u32 %v1860_v3, %v1635_v2 }
 0x133   : > { %914 = vmatpush.bf16.msra.mxu0 %v1628_v31  ;;  %938 = vmatpush.bf16.msra.mxu2 %v1660_v40  ;;  %s1599_s27 = sshll.u32 %s2239_s26, 3  ;;  %s1596_s29 = sadd.s32 4294967295, %s2581_s0  ;;  %v1763_v16 = vld [vmem:[#allocation11 + $0x84] sm:$0xf0]  ;;  %v1623_v17 = vld [vmem:[#allocation10 + $0x20] sm:$0xf]  ;;  %v1782_v20 = vor.u32 %v1896_v13, %v1781_v12 }
 0x134   : > { %1173 = vmatpush.bf16.msra.mxu3 %v1726_v8  ;;  %v1857_v18 = vld [vmem:[#allocation10 + $0x28] sm:$0xf0]  ;;  %s743_s3 = scalar_lea.vmem %s2583_s2, %s1599_s27  ;;  %s2484_s15 = ssub.s32 %s1596_s29, %s2239_s26  ;;  %v1888_v21 = vld [vmem:[#allocation11 + $0x64] sm:$0xf]  ;;  %v1751_v52 = vld [vmem:[#allocation11 + $0x6c] sm:$0xf0]  ;;  %v1766_v22 = vor.u32 %v1891_v11, %v1763_v16 }
 0x135   : > { %v744_v19 = vld [vmem:[%s743_s3] sm:$0xff]  ;;  %s1600_s7 = sshll.u32 %s2484_s15, 3  ;;  %v1893_v24 = vld [vmem:[#allocation11 + $0x88] sm:$0xf0]  ;;  %v1624_v25 = vor.u32 %v1857_v18, %v1623_v17  ;;  %v2259_v26 = vmov 0   ;;  %v1754_v31 = vor.u32 %v1888_v21, %v1751_v52  ;;  %s1850_s19 = smul.u32 12, %s2239_s26 }
 0x136   : > { %927 = vmatpush.bf16.msra.mxu1 %v1632_v38  ;;  %vm1000_vm0 = vcmp.gt.f32.partialorder %v744_v19, 0.0  ;;  %s746_s18 = scalar_lea.vmem %s2583_s2, %s1600_s7  ;;  %v1769_v23 = vld [vmem:[#allocation11 + $0x80] sm:$0xf]  ;;  %v1611_v28 = vld [vmem:[#allocation10 + $0x8] sm:$0xf]  ;;  %1978 = vset.pattern.permute.xlu0 %v2259_v26  ;;  %s1851_s21 = smul.u32 12, %s2484_s15 }
 0x137   : > { %915 = vmatpush.bf16.msra.mxu0 %v1616_v41  ;;  %939 = vmatpush.bf16.msra.mxu2 %v1648_v55  ;;  %v1001_v27 = vsel %vm1000_vm0, 1, %v2259_v26  ;;  %v1854_v53 = vld [vmem:[#allocation10 + $0x10] sm:$0xf0]  ;;  %v747_v29 = vld [vmem:[%s746_s18] sm:$0xff]  ;;  %v1770_v30 = vor.u32 %v1893_v24, %v1769_v23  ;;  %v1757_v0 = vld [vmem:[#allocation11 + $0x68] sm:$0xf] }
 0x138   : > { %1174 = vmatpush.bf16.msra.mxu3 %v1714_v45  ;;  %1003 = vperm.xlu0 %1978, %v1001_v27   ;;  %v1890_v32 = vld [vmem:[#allocation11 + $0x70] sm:$0xf0]  ;;  %v1612_v4 = vor.u32 %v1854_v53, %v1611_v28  ;;  %vm1259_vm1 = vcmp.gt.f32.partialorder %v747_v29, 0.0  ;;  %v1885_v8 = vld [vmem:[#allocation11 + $0x4c] sm:$0xf]  ;;  %s2499_s20 = scalar_lea.vmem [#allocation2], %s1850_s19 }
 0x139   : > { %v1739_v34 = vld [vmem:[#allocation11 + $0x54] sm:$0xf0]  ;;  %v1758_v35 = vor.u32 %v1890_v32, %v1757_v0  ;;  %v1260_v36 = vsel %vm1259_vm1, 1, %v2259_v26  ;;  %v1745_v38 = vld [vmem:[#allocation11 + $0x50] sm:$0xf]  ;;  %v729_v61 = vld [vmem:[%s2499_s20] sm:$0xff] }
 0x13a   : > { %928 = vmatpush.bf16.msra.mxu1 %v1620_v54  ;;  %v1742_v37 = vor.u32 %v1885_v8, %v1739_v34  ;;  %v1887_v39 = vld [vmem:[#allocation11 + $0x58] sm:$0xf0]  ;;  %v1882_v40 = vld [vmem:[#allocation11 + $0x34] sm:$0xf]  ;;  %v1727_v41 = vld [vmem:[#allocation11 + $0x3c] sm:$0xf0]  ;;  %v731_v62 = vunpack.c.l.bf16 %v729_v61  ;;  %v732_v1 = vunpack.c.h.bf16 %v729_v61 }
 0x13b   : > { %916 = vmatpush.bf16.msra.mxu0 %v1604_v56  ;;  %940 = vmatpush.bf16.msra.mxu2 %v1636_v15  ;;  %v1746_v42 = vor.u32 %v1887_v39, %v1745_v38  ;;  %v1730_v43 = vor.u32 %v1882_v40, %v1727_v41  ;;  %v1733_v44 = vld [vmem:[#allocation11 + $0x38] sm:$0xf]  ;;  %v1884_v45 = vld [vmem:[#allocation11 + $0x40] sm:$0xf0]  ;;  %v1879_v46 = vld [vmem:[#allocation11 + $0x1c] sm:$0xf] }
 0x13c   : > { %1175 = vmatpush.bf16.msra.mxu3 %v1702_v59  ;;  %v1715_v47 = vld [vmem:[#allocation11 + $0x24] sm:$0xf0]  ;;  %v1734_v48 = vor.u32 %v1884_v45, %v1733_v44  ;;  %v1721_v50 = vld [vmem:[#allocation11 + $0x20] sm:$0xf]  ;;  %v1881_v51 = vld [vmem:[#allocation11 + $0x28] sm:$0xf0] }
 0x13d   : > { %v1718_v49 = vor.u32 %v1879_v46, %v1715_v47  ;;  %v1876_v54 = vld [vmem:[#allocation11 + $0x4] sm:$0xf]  ;;  %v1703_v55 = vld [vmem:[#allocation11 + $0xc] sm:$0xf0]  ;;  %v1722_v56 = vor.u32 %v1881_v51, %v1721_v50  ;;  %v1709_v58 = vld [vmem:[#allocation11 + $0x8] sm:$0xf] }
 0x13e   : > { %917 = vmatmul.bf16.vlgmr.msra.gmra.mxu0 %v2468_v5  ;;  %929 = vmatpush.bf16.msra.mxu1 %v1608_v6  ;;  %v1706_v57 = vor.u32 %v1876_v54, %v1703_v55  ;;  %v1878_v59 = vld [vmem:[#allocation11 + $0x10] sm:$0xf0]  ;;  %s2503_s22 = scalar_lea.vmem [#allocation3], %s1851_s21  ;;  %v1979_v29 = vld [vmem:[%s2590_s9] ss:$0 sm:$0xff]  ;;  %s1267_s6 = scalar_lea.vmem [#allocation13], %s1599_s27 }
 0x13f   : > { %1181 = vmatpush.bf16.msrb.mxu0 %v1790_v60  ;;  %1176 = vmatmul.bf16.vlgmr.msra.gmra.mxu3 %v2472_v9  ;;  %v1710_v60 = vor.u32 %v1878_v59, %v1709_v58  ;;  %v737_v3 = vld [vmem:[%s2503_s22] sm:$0xff]  ;;  %v730_v32 = vld [vmem:[%s2499_s20 + $0x8] sm:$0xf]  ;;  %s1270_s25 = scalar_lea.vmem [#allocation14], %s1600_s7  ;;  %s719_s26 = sadd.s32 1, %s2239_s26  }
 0x140   : > { %941 = vmatpush.bf16.msra.mxu2 %v1624_v25  ;;  %1262 = vperm.xlu0 %1978, %v1260_v36   ;;  %v740_v0 = vunpack.c.h.bf16 %v737_v3  ;;  %p718_p1 = scmp.ge.s32.totalorder %s719_s26, %s2581_s0 }
 0x141   : > { %930 = vmatmul.bf16.vlgmr.msra.gmra.mxu1 %v2468_v5 }
 0x142   : > { %1194 = vmatpush.bf16.msrb.mxu1 %v1794_v10  ;;  %v739_v10 = vunpack.c.l.bf16 %v737_v3 }
 0x143   : > { %1182 = vmatpush.bf16.msrb.mxu0 %v1778_v14 }
 0x144   : > { %942 = vmatpush.bf16.msra.mxu2 %v1612_v4 }
 0x146   : > { %1195 = vmatpush.bf16.msrb.mxu1 %v1782_v20 }
 0x147   : > { %1183 = vmatpush.bf16.msrb.mxu0 %v1766_v22  ;;  %943 = vmatmul.bf16.vlgmr.msra.gmra.mxu2 %v2468_v5 }
 0x14a   : > { %1196 = vmatpush.bf16.msrb.mxu1 %v1770_v30 }
 0x14b   : > { %1184 = vmatpush.bf16.msrb.mxu0 %v1754_v31 }
 0x14e   : > { %1197 = vmatpush.bf16.msrb.mxu1 %v1758_v35 }
 0x14f   : > { %1185 = vmatpush.bf16.msrb.mxu0 %v1742_v37 }
 0x152   : > { %1198 = vmatpush.bf16.msrb.mxu1 %v1746_v42 }
 0x153   : > { %1186 = vmatpush.bf16.msrb.mxu0 %v1730_v43  ;;  %v733_v43 = vunpack.c.l.bf16 %v730_v32 }
 0x156   : > { %1199 = vmatpush.bf16.msrb.mxu1 %v1734_v48 }
 0x157   : > { %1187 = vmatpush.bf16.msrb.mxu0 %v1718_v49 }
 0x15a   : > { %1200 = vmatpush.bf16.msrb.mxu1 %v1722_v56 }
 0x15b   : > { %1188 = vmatpush.bf16.msrb.mxu0 %v1706_v57 }
 0x15e   : > { %1189 = vmatmul.bf16.vlgmr.msrb.gmra.mxu0 %v2472_v9  ;;  %1201 = vmatpush.bf16.msrb.mxu1 %v1710_v60 }
 0x161   : > { %1202 = vmatmul.bf16.vlgmr.msrb.gmra.mxu1 %v2472_v9 }
 0x1bb   : > { %v918_v63 = vpop.f32.mrf.mxu0 }
 0x1bc   : > { %v948_v2 = vadd.f32 %v918_v63, %v731_v62 }
 0x1be   : > { %v1697_v5 = vmul.f32 -1.442695, %v948_v2  ;;  %v931_v6 = vpop.f32.mrf.mxu1 }
 0x1bf   : > { %v968_v11 = vadd.f32 %v931_v6, %v732_v1 }
 0x1c0   : > { %1981 = vpow2.f32 %v1697_v5  ;;  %v1980_v5 = vld [vmem:[%s2591_s10] ss:$0 sm:$0xff] }
 0x1c1   : > { %v1698_v9 = vmul.f32 -1.442695, %v968_v11  ;;  %v1004_v11 = vpop.permute.xlu0 %1003 }
 0x1c2   : > { %v1177_v12 = vpop.f32.mrf.mxu3  ;;  %vm1005_vm14 = vcmp.eq.s32.totalorder %v1004_v11, 1 }
 0x1c3   : > { %v1207_v13 = vadd.f32 %v1177_v12, %v739_v10  ;;  %1983 = vpow2.f32 %v1698_v9  ;;  %v920_v14 = vpop.f32.mrf.mxu0 }
 0x1c5   : > { %v1795_v15 = vmul.f32 -1.442695, %v1207_v13 }
 0x1c6   : > { %v1982_v16 = vpop.eup %1981  ;;  %v933_v17 = vpop.f32.mrf.mxu1 }
 0x1c7   : > { %v952_v18 = vadd.f32 1.0, %v1982_v16  ;;  %1985 = vpow2.f32 %v1795_v15 }
 0x1c9   : > { %v1984_v19 = vpop.eup %1983  ;;  %1987 = vrcp.f32 %v952_v18  ;;  %v964_v26 = vand.u32 2147483648, %v952_v18  ;;  %vm958_vm2 = vweird.f32 %v952_v18  ;;  %v962_v53 = vand.u32 2147483647, %v952_v18  ;;  %v1263_v8 = vpop.permute.xlu0 %1262 }
 0x1ca   : > { %v972_v20 = vadd.f32 1.0, %v1984_v19  ;;  %v1179_v21 = vpop.f32.mrf.mxu3  ;;  %v944_v23 = vpop.f32.mrf.mxu2 }
 0x1cb   : > { %v965_v34 = vor.u32 1.1754944e-38, %v964_v26  ;;  %vm963_vm7 = vcmp.eq.f32.partialorder %v962_v53, 8.507059e+37  ;;  %v992_v37 = vadd.f32 %v1979_v29, %v944_v23 }
 0x1cc   : > { %1989 = vrcp.f32 %v972_v20  ;;  %vm978_vm5 = vweird.f32 %v972_v20  ;;  %v984_v38 = vand.u32 2147483648, %v972_v20  ;;  %v982_v42 = vand.u32 2147483647, %v972_v20 }
 0x1cd   : > { %v1986_v52 = vpop.eup %1985 }
 0x1ce   : > { %v2506_v22 = vadd.f32 1.0, %v1986_v52  ;;  %v985_v54 = vor.u32 1.1754944e-38, %v984_v38  ;;  %vm983_vm9 = vcmp.eq.f32.partialorder %v982_v42, 8.507059e+37 }
 0x1cf   : > { %v1988_v24 = vpop.eup %1987 }
 0x1d0   : > { %1991 = vrcp.f32 %v2506_v22  ;;  %v954_v25 = vmul.f32 %v1988_v24, %v952_v18  ;;  %vm959_vm3 = vweird.f32 %v1988_v24  ;;  %vm1217_vm10 = vweird.f32 %v2506_v22  ;;  %v738_v18 = vld [vmem:[%s2503_s22 + $0x8] sm:$0xf] }
 0x1d1   : > { %vm2513_vm4 = vmor %vm958_vm2, %vm959_vm3  ;;  %v1223_v61 = vand.u32 2147483648, %v2506_v22  ;;  %v1221_v63 = vand.u32 2147483647, %v2506_v22  ;;  %vm1264_vm3 = vcmp.eq.s32.totalorder %v1263_v8, 1 }
 0x1d2   : > { %v1990_v27 = vpop.eup %1989  ;;  %v955_v28 = vsub.f32 1.0, %v954_v25  ;;  %v946_v39 = vpop.f32.mrf.mxu2 }
 0x1d3   : > { %v974_v30 = vmul.f32 %v1990_v27, %v972_v20  ;;  %vm979_vm6 = vweird.f32 %v1990_v27  ;;  %v1224_v10 = vor.u32 1.1754944e-38, %v1223_v61  ;;  %vm1222_vm13 = vcmp.eq.f32.partialorder %v1221_v63, 8.507059e+37 }
 0x1d4   : > { %v956_v31 = vmul.f32 %v1988_v24, %v955_v28  ;;  %vm2520_vm8 = vmor %vm978_vm5, %vm979_vm6 }
 0x1d5   : > { %v975_v4 = vsub.f32 1.0, %v974_v30 }
 0x1d6   : > { %v1992_v35 = vpop.eup %1991  ;;  %v957_v36 = vadd.f32 %v1988_v24, %v956_v31 }
 0x1d7   : > { %v1213_v40 = vmul.f32 %v1992_v35, %v2506_v22  ;;  %v976_v41 = vmul.f32 %v1990_v27, %v975_v4  ;;  %vm1218_vm11 = vweird.f32 %v1992_v35  ;;  %v741_v22 = vunpack.c.l.bf16 %v738_v18 }
 0x1d8   : > { %v961_v44 = vsel %vm2513_vm4, %v1988_v24, %v957_v36  ;;  %vm2529_vm12 = vmor %vm1217_vm10, %vm1218_vm11 }
 0x1d9   : > { %v966_v47 = vsel %vm963_vm7, %v965_v34, %v961_v44  ;;  %v1214_v49 = vsub.f32 1.0, %v1213_v40  ;;  %v977_v50 = vadd.f32 %v1990_v27, %v976_v41 }
 0x1da   : > { %v993_v51 = vmul.f32 %v992_v37, %v966_v47 }
 0x1db   : > { %v1190_v45 = vpop.f32.mrf.mxu0  ;;  %v981_v57 = vsel %vm2520_vm8, %v1990_v27, %v977_v50  ;;  %v1215_v59 = vmul.f32 %v1992_v35, %v1214_v49 }
 0x1dc   : > { %v1227_v48 = vadd.f32 %v1190_v45, %v740_v0  ;;  %v994_v58 = vadd.f32 %v993_v51, %v733_v43  ;;  %v986_v60 = vsel %vm983_vm9, %v985_v54, %v981_v57 }
 0x1dd   : > { %v1216_v62 = vadd.f32 %v1992_v35, %v1215_v59  ;;  %v996_v3 = vsub.f32 1.0, %v986_v60  ;;  %v998_v9 = vmul.f32 %v2235_v7, %v986_v60 }
 0x1de   : > { %v1796_v55 = vmul.f32 -1.442695, %v1227_v48  ;;  %v1203_v56 = vpop.f32.mrf.mxu1 }
 0x1df   : > { %v1220_v15 = vsel %vm2529_vm12, %v1992_v35, %v1216_v62  ;;  %v1251_v17 = vadd.f32 %v1980_v5, %v1203_v56 }
 0x1e0   : > { %1993 = vpow2.f32 %v1796_v55  ;;  %v1225_v19 = vsel %vm1222_vm13, %v1224_v10, %v1220_v15 }
 0x1e1   : > { %1995 = vtanh.f32 %v994_v58  ;;  %v1252_v23 = vmul.f32 %v1251_v17, %v1225_v19 }
 0x1e3   : > { %v1192_v1 = vpop.f32.mrf.mxu0  ;;  %v1253_v26 = vadd.f32 %v1252_v23, %v741_v22 }
 0x1e6   : > { %v1994_v6 = vpop.eup %1993  ;;  %v1205_v12 = vpop.f32.mrf.mxu1 }
 0x1e7   : > { %v1996_v13 = vpop.eup %1995  ;;  %v1231_v14 = vadd.f32 1.0, %v1994_v6 }
 0x1e8   : > { %v997_v16 = vmul.f32 %v1996_v13, %v996_v3 }
 0x1e9   : > { %1997 = vrcp.f32 %v1231_v14  ;;  %v1243_v28 = vand.u32 2147483648, %v1231_v14  ;;  %v1241_v29 = vand.u32 2147483647, %v1231_v14  ;;  %vm1237_vm0 = vweird.f32 %v1231_v14 }
 0x1ea   : > { %v999_v20 = vadd.f32 %v998_v9, %v997_v16  ;;  %1999 = vtanh.f32 %v1253_v26 }
 0x1eb   : > { %vm1242_vm2 = vcmp.eq.f32.partialorder %v1241_v29, 8.507059e+37 }
 0x1ec   : > { %v1006_v21 = vsel %vm1005_vm14, %v999_v20, %v2235_v7   ;;  %v1266_v52 = vsel %vm1005_vm14, %v999_v20, 0.0  ;;  %v1244_v7 = vor.u32 1.1754944e-38, %v1243_v28 }
 0x1ed   : > { %1268 = vst [vmem:[%s1267_s6] sm:$0xff] %v1266_v52 }
 0x1ef   : > { %v1998_v24 = vpop.eup %1997 }
 0x1f0   : > { %v1233_v25 = vmul.f32 %v1998_v24, %v1231_v14  ;;  %vm1238_vm15 = vweird.f32 %v1998_v24  ;;  %v2000_v4 = vpop.eup %1999 }
 0x1f1   : > { %vm1239_vm1 = vmor %vm1237_vm0, %vm1238_vm15 }
 0x1f2   : > { %v1234_v27 = vsub.f32 1.0, %v1233_v25 }
 0x1f4   : > { %v1235_v53 = vmul.f32 %v1998_v24, %v1234_v27 }
 0x1f6   : > { %v1236_v30 = vadd.f32 %v1998_v24, %v1235_v53 }
 0x1f8   : > { %v1240_v31 = vsel %vm1239_vm1, %v1998_v24, %v1236_v30 }
 0x1f9   : > { %v1245_v0 = vsel %vm1242_vm2, %v1244_v7, %v1240_v31  ;;  %v2603_v7 = vmov %v1006_v21 }
 0x1fa   : > { %v1255_v32 = vsub.f32 1.0, %v1245_v0  ;;  %v1257_v35 = vmul.f32 %v2231_v33, %v1245_v0 }
 0x1fc   : > { %v1256_v34 = vmul.f32 %v2000_v4, %v1255_v32  ;;  %v2605_v32 = vmov (%p718_p1), %v1006_v21 }
 0x1fd   :  { %721 = sbr.rel (!%p718_p1) target bundleno = 284 (0x11c), region = 126 }
 0x1fe   : > { %v1258_v36 = vadd.f32 %v1257_v35, %v1256_v34 }
 0x200   : > { %v1265_v37 = vsel %vm1264_vm3, %v1258_v36, %v2231_v33   ;;  %v1269_v38 = vsel %vm1264_vm3, %v1258_v36, 0.0 }
 0x201   : > { %1271 = vst [vmem:[%s1270_s25] sm:$0xff] %v1269_v38  ;;  %v2602_v33 = vmov %v1265_v37  ;;  %v2604_v0 = vmov (%p718_p1), %v1265_v37 }
 0x202 PF:  { %1272 = vst [vmem:[#allocation16] sm:$0xff] %v2247_v32  ;;  %p1383_p2 = scmp.ge.s32.totalorder %s2581_s0, 8  ;;  %v2247_v32 = vphi %v2449_v32, %v2605_v32   ;;  %v2243_v0 = vphi %v2447_v0, %v2604_v0  }
 0x203   :  { %1273 = vst [vmem:[#allocation17] sm:$0xff] %v2243_v0  ;;  %s2249_s2 = smov (!%p1383_p2), %s2581_s0  }
 0x204   :  { %1384 = sbr.rel (%p1383_p2) target bundleno = 530 (0x212), region = 131 }
 0x209 LB: > { %s1797_s9 = sshll.u32 %s2251_s2, 3  ;;  %v2260_v33 = vmov 0.0   ;;  %s1277_s2 = sadd.s32 1, %s2251_s2   ;;  %s2251_s2 = sphi %s2249_s2, %s1277_s2  }
 0x20a   : > { %s1281_s10 = scalar_lea.vmem [#allocation13], %s1797_s9  ;;  %s1283_s16 = scalar_lea.vmem [#allocation14], %s1797_s9 }
 0x20b   : > { %1282 = vst [vmem:[%s1281_s10] sm:$0xff] %v2260_v33  ;;  %p1276_p3 = scmp.ge.s32.totalorder %s1277_s2, 8 }
 0x20c   : > { %1284 = vst [vmem:[%s1283_s16] sm:$0xff] %v2260_v33 }
 0x20d   :  { %1279 = sbr.rel (!%p1276_p3) target bundleno = 521 (0x209), region = 137 }
 0x212 PF:  { %s1304_s7 = sshll.u32 %s2593_s12, 4  ;;  %s2261_s8 = smov [#allocation14]   ;;  %s1305_s7 = int_to_ptr.hbm [resolvable:$true] %s1304_s7 }
 0x213   :  { %s1302_s0 = sshll.u32 %s2261_s8, 4  ;;  %s2262_s17 = smov 128   ;;  %s1303_s0 = int_to_ptr.vmem [resolvable:$true] %s1302_s0 }
 0x214   :  { %s2263_s18 = smov 8   ;;  %s2264_s19 = smov [#allocation13]  }
 0x215   :  { %1310 = dma.vmem_to_hbm [thread:$0]  %s1303_s0, 1024, %s1305_s7, [#allocation15], %s2262_s17, %s2262_s17, %s2263_s18  }
 0x216   :  { %s1289_s20 = sshll.u32 %s2264_s19, 4  ;;  %s1291_s1 = sshll.u32 %s2592_s11, 4  ;;  %s1290_s20 = int_to_ptr.vmem [resolvable:$true] %s1289_s20  ;;  %s1292_s1 = int_to_ptr.hbm [resolvable:$true] %s1291_s1 }
 0x217   :  { %1297 = dma.vmem_to_hbm [thread:$0]  %s1290_s20, 1024, %s1292_s1, [#allocation7], %s2262_s17, %s2262_s17, %s2263_s18  }
 0x218   :  { %s1318_s12 = sshll.u32 %s2594_s13, 4  ;;  %s2265_s24 = smov [#allocation16]   ;;  %s1319_s12 = int_to_ptr.hbm [resolvable:$true] %s1318_s12 }
 0x219   :  { %s1316_s6 = sshll.u32 %s2265_s24, 4  ;;  %s2266_s25 = smov [#allocation17]   ;;  %s1317_s6 = int_to_ptr.vmem [resolvable:$true] %s1316_s6 }
 0x21a   :  { %1321 = dma.vmem_to_hbm [thread:$0]  %s1317_s6, 128, %s1319_s12, [#allocation15]  }
 0x21b   :  { %s1327_s27 = sshll.u32 %s2266_s25, 4  ;;  %s1329_s29 = sshll.u32 %s2595_s14, 4  ;;  %s1328_s27 = int_to_ptr.vmem [resolvable:$true] %s1327_s27  ;;  %s1330_s29 = int_to_ptr.hbm [resolvable:$true] %s1329_s29 }
 0x21c   :  { %1332 = dma.vmem_to_hbm [thread:$0]  %s1328_s27, 128, %s1330_s29, [#allocation18]  }
 0x21d   :  { %2223 = dma.done.wait [#allocation7], 1024  }
 0x21e   :  { %2224 = vsyncadd [#allocation7], 4294966272 }
 0x21f   :  { %2225 = dma.done.wait [#allocation15], 1152  }
 0x220   :  { %2226 = vsyncadd [#allocation15], 4294966144 }
 0x221   :  { %2227 = dma.done.wait [#allocation18], 128  }
 0x222   :  { %2228 = vsyncadd [#allocation18], 4294967168 }
 0x223   :  { %1349 = vsyncpa [#allocation6], 1 }
 0x224   :  { %1350 = vsyncpa [#allocation9], 1 }
 0x225   :  { %1351 = vsyncpa [#allocation12], 1 }
 0x226   :  { %1352 = vsyncpa [#allocation7], 1 }
 0x227   :  { %1353 = vsyncpa [#allocation15], 1 }
 0x228   :  { %1354 = vsyncpa [#allocation18], 1 }

</bundles_post_ra>
